<compile_context>
chip_gen: v5e
topology: v5e:2x2
jax: 0.10.0
libtpu: 0.0.40
codegen_flags: <defaults>
</compile_context>

<pallas_src>
import functools

import jax
import jax.numpy as jnp
import numpy as np
from jax.experimental import pallas as pl
from jax.experimental.pallas import tpu as pltpu


# ----------------------------------------------------------------------------
# Band (Toeplitz) matrices: fold the (kh, kw) taps + the H/W "same" zero
# padding of a cubic single-channel conv into K matrices of shape (H*W, H*W):
#   out[d, :] = sum_kd  xpad[d + kd, :] @ B[kd]     (xpad has depth halo p)
# ----------------------------------------------------------------------------
def make_band_matrices(w, H, W):
    """w: (K, K, K) conv weights (cross-correlation, PyTorch layout).
    Returns (K, H*W, H*W) float32."""
    K = w.shape[-1]
    p = (K - 1) // 2
    ih = jnp.arange(H)[:, None]
    oh = jnp.arange(H)[None, :]
    iw = jnp.arange(W)[:, None]
    ow = jnp.arange(W)[None, :]
    kh = ih - oh + p                      # (H, H)
    kw = iw - ow + p                      # (W, W)
    vh = (kh >= 0) & (kh < K)
    vw = (kw >= 0) & (kw < K)
    khc = jnp.clip(kh, 0, K - 1)
    kwc = jnp.clip(kw, 0, K - 1)
    # B[kd, ih, iw, oh, ow] = w[kd, ih-oh+p, iw-ow+p]   (0 outside the kernel)
    B = w[:, khc[:, None, :, None], kwc[None, :, None, :]]       # (K,H,W,H,W)
    mask = vh[:, None, :, None] & vw[None, :, None, :]           # (H,W,H,W)
    B = jnp.where(mask[None], B, 0.0).astype(jnp.float32)
    return B.reshape(K, H * W, H * W)


def prepare_duulm_operands(params, H, W):
    """Precompute (once, outside the jitted forward) the per-stage stacked
    band matrices, biases and prox alphas.

    Stage s computes:  x_prev <- [xs_im2col | prox(x_prev)_im2col] @ band[s] + bias[s]
      stage 0       : net.conv1(xs) + b1                      (prox part band = 0)
      stages 1..F   : blk.conv1(xs) + blk.conv2(prox(x_prev)) + (b1 + b2)
      stage F+1     : w2 * prox(x_prev)                        (xs part band = 0)
    Returns bands (S, (K1+K2)*HW, HW) f32, biases (S,) f32, alphas (S,) f32.
    """
    K1 = params["w1"].shape[-1]
    K2 = params["blocks"][0]["w2"].shape[-1]
    HW = H * W
    p2 = (K2 - 1) // 2

    zA = jnp.zeros((K1 * HW, HW), jnp.float32)
    zB = jnp.zeros((K2 * HW, HW), jnp.float32)

    def stage_band(wA, wB):
        A = make_band_matrices(wA, H, W).reshape(K1 * HW, HW) if wA is not None else zA
        B = make_band_matrices(wB, H, W).reshape(K2 * HW, HW) if wB is not None else zB
        return jnp.concatenate([A, B], axis=0)

    bands, biases, alphas = [], [], []
    # stage 0: net.conv1 applied to xs (no prox contribution yet).
    bands.append(stage_band(params["w1"][0, 0], None))
    biases.append(params["b1"].reshape(()))
    alphas.append(jnp.zeros((), jnp.float32))       # unused (x_prev == 0)
    # stages 1..folds: one per unrolled block.
    for blk in params["blocks"]:
        bands.append(stage_band(blk["w1"][0, 0], blk["w2"][0, 0]))
        biases.append((blk["b1"] + blk["b2"]).reshape(()))
        alphas.append(blk["alpha"].reshape(()))
    # final stage: net.conv2(net.prox(x_prev)) -- a 1x1x1 conv == scalar scale,
    # expressed as a K2 band whose centre depth tap is w2 * I(HW).
    w2 = params["w2"].reshape(())
    Bf = jnp.zeros((K2, HW, HW), jnp.float32).at[p2].set(
        w2 * jnp.eye(HW, dtype=jnp.float32))
    bands.append(jnp.concatenate([zA, Bf.reshape(K2 * HW, HW)], axis=0))
    biases.append(jnp.zeros((), jnp.float32))
    alphas.append(params["alpha"].reshape(()))

    return (jnp.stack(bands),
            jnp.stack(biases).astype(jnp.float32),
            jnp.stack(alphas).astype(jnp.float32))


# ----------------------------------------------------------------------------
# Fused kernel
# ----------------------------------------------------------------------------
def _prox(x, alpha):
    # prox(x) = x / (1 + exp(-(|x| - alpha)))  (tau = 1); exp + recip on EUP.
    return x * pl.reciprocal(1.0 + jnp.exp(-(jnp.abs(x) - alpha)), approx=True)


def _duulm_fused_kernel(alphas_ref, biases_ref, xs_col_ref, band_ref, out_ref,
                        xprev_ref, lhs_ref, ypad_ref, *,
                        K1, K2, D, HW, NBLK, NSTAGE):
    """Grid = (batch_blocks, NSTAGE).  Per stage:
         x_prev <- lhs @ band[stage] + bias[stage]
       with lhs = [xs depth-im2col | prox(x_prev) depth-im2col] kept in VMEM."""
    s = pl.program_id(1)
    p2 = (K2 - 1) // 2

    @pl.when(s == 0)
    def _init():
        # x_prev := 0 for this batch block (prox(0) == 0 keeps stage 0 exact).
        xprev_ref[...] = jnp.zeros_like(xprev_ref)
        # xs im2col never changes across stages -> write into the LHS once.
        lhs_ref[:, :K1 * HW] = xs_col_ref[...]
        # Depth-halo rows of the prox operand are never overwritten -> zero once.
        ypad_ref[...] = jnp.zeros_like(ypad_ref)

    # y = prox(x_prev); stage 0 uses x_prev == 0 (and a zero band tail anyway).
    y = _prox(xprev_ref[...], alphas_ref[s])                   # (NBLK*D, HW)

    # Refresh the prox(x_prev) depth-im2col tail of the LHS (per batch element,
    # static unrolled slices only -> cheap vst/vld, no reshapes).
    for n in range(NBLK):
        ypad_ref[n, p2:p2 + D, :] = y[n * D:(n + 1) * D, :]
    for n in range(NBLK):
        for kd in range(K2):
            lhs_ref[n * D:(n + 1) * D,
                    (K1 + kd) * HW:(K1 + kd + 1) * HW] = ypad_ref[n, kd:kd + D, :]

    # One deep-K MXU matmul per stage:  (M, (K1+K2)*HW) @ ((K1+K2)*HW, HW)
    acc = jnp.dot(lhs_ref[...], band_ref[...],
                  preferred_element_type=jnp.float32) + biases_ref[s]

    @pl.when(s < NSTAGE - 1)
    def _carry():
        xprev_ref[...] = acc            # carry x_prev to the next stage

    @pl.when(s == NSTAGE - 1)
    def _finish():
        out_ref[...] = acc              # final network output


_SMEM = pl.BlockSpec(memory_space=pltpu.MemorySpace.SMEM)


def _pick_batch_block(n, d, max_m=256):
    """Largest divisor of n with n_blk*d <= max_m.  Fewer batch blocks means
    the band set is streamed from HBM fewer times and the matmul M is larger."""
    best = 1
    for cand in range(1, n + 1):
        if n % cand == 0 and cand * d <= max_m:
            best = cand
    return best


def duulm_fused_pallas(xs_col, bands, biases, alphas, *, k1, k2, D, HW, n_blk):
    """xs_col: (nb, M, K1*HW) depth-im2col of the upsampled input.
    bands: (S, (K1+K2)*HW, HW).  Returns (nb, M, HW) float32."""
    nb, M, _ = xs_col.shape
    nstage, ktot_hw, _ = bands.shape
    kernel = functools.partial(_duulm_fused_kernel, K1=k1, K2=k2, D=D, HW=HW,
                               NBLK=n_blk, NSTAGE=nstage)
    return pl.pallas_call(
        kernel,
        out_shape=jax.ShapeDtypeStruct((nb, M, HW), jnp.float32),
        grid_spec=pltpu.PrefetchScalarGridSpec(
            num_scalar_prefetch=0,
            grid=(nb, nstage),
            in_specs=[
                _SMEM,                                                   # alphas (S,)
                _SMEM,                                                   # biases (S,)
                pl.BlockSpec((None, M, k1 * HW), lambda n, s: (n, 0, 0)),  # xs im2col
                pl.BlockSpec((None, ktot_hw, HW), lambda n, s: (s, 0, 0)),  # band[s]
            ],
            out_specs=pl.BlockSpec((None, M, HW), lambda n, s: (n, 0, 0)),
            scratch_shapes=[
                pltpu.VMEM((M, HW), jnp.float32),                 # x_prev carry
                pltpu.VMEM((M, (k1 + k2) * HW), jnp.float32),     # fused matmul LHS
                pltpu.VMEM((n_blk, D + (k2 - 1), HW), jnp.float32),  # prox depth pad
            ],
        ),
        compiler_params=pltpu.CompilerParams(
            dimension_semantics=("parallel", "arbitrary")),
    )(alphas, biases, xs_col, bands)


# ----------------------------------------------------------------------------
# Full duulm_net forward (num_channels = 1)
# ----------------------------------------------------------------------------
@functools.partial(jax.jit, static_argnames=("scale", "k1", "k2"))
def duulm_forward(x, bands, biases, alphas, *, scale, k1, k2):
    """x: (N, 1, D0, H0, W0) f32 -> (N, 1, D0*s, H0*s, W0*s) f32.
    bands/biases/alphas come from prepare_duulm_operands (built once)."""
    N, C, D0, H0, W0 = x.shape
    assert C == 1
    D, H, W = D0 * scale, H0 * scale, W0 * scale
    HW = H * W
    p1 = (k1 - 1) // 2

    # TODO(synk): nearest-neighbour upsample + depth im2col are pure layout
    # gathers; kept as one-time JAX glue rather than in-kernel DMA.
    xs = x[:, 0]
    xs = jnp.repeat(jnp.repeat(jnp.repeat(xs, scale, axis=1), scale, axis=2),
                    scale, axis=3)
    xs = xs.reshape(N, D, HW).astype(jnp.float32)
    xs_pad = jnp.pad(xs, ((0, 0), (p1, p1), (0, 0)))
    # Depth im2col: column block kd holds xs_pad[:, d+kd, :]  -> (N, D, K1*HW)
    xs_col = jnp.concatenate([xs_pad[:, kd:kd + D, :] for kd in range(k1)],
                             axis=-1)

    n_blk = _pick_batch_block(N, D)
    nb = N // n_blk
    M = n_blk * D
    xs_col = xs_col.reshape(nb, M, k1 * HW)

    out = duulm_fused_pallas(xs_col, bands, biases, alphas,
                             k1=k1, k2=k2, D=D, HW=HW, n_blk=n_blk)
    return out.reshape(N, 1, D, H, W)


# ----------------------------------------------------------------------------
# Pure-JAX reference (mirrors the PyTorch forward)
# ----------------------------------------------------------------------------
def _conv3d_ref(v, w, b=None):
    p = (w.shape[-1] - 1) // 2
    dn = jax.lax.conv_dimension_numbers(v.shape, w.shape,
                                        ("NCDHW", "OIDHW", "NCDHW"))
    o = jax.lax.conv_general_dilated(v, w, (1, 1, 1), [(p, p)] * 3,
                                     dimension_numbers=dn)
    if b is not None:
        o = o + b.reshape(1, -1, 1, 1, 1)
    return o


def _prox_ref(v, alpha):
    return v / (1.0 + jnp.exp(-(jnp.abs(v) - alpha[0])))


def duulm_reference(x, params, scale):
    xs = jnp.repeat(jnp.repeat(jnp.repeat(x, scale, axis=2), scale, axis=3),
                    scale, axis=4)
    x_prev = _conv3d_ref(xs, params["w1"], params["b1"])
    for blk in params["blocks"]:
        y = _prox_ref(x_prev, blk["alpha"])
        x_prev = (_conv3d_ref(xs, blk["w1"], blk["b1"]) +
                  _conv3d_ref(y, blk["w2"], blk["b2"]))
    y = _prox_ref(x_prev, params["alpha"])
    return _conv3d_ref(y, params["w2"])


# ----------------------------------------------------------------------------
# Demo / self-check
# ----------------------------------------------------------------------------
if __name__ == "__main__":
    key = jax.random.PRNGKey(0)
    scale_factor = 2
    folds = 8
    K1, K2 = 15, 5
    N, D0, H0, W0 = 2, 4, 4, 8       # upsampled volume (8, 8, 16) -> H*W = 128

    def conv_params(k, ksize, fan_in):
        kw, kb = jax.random.split(k)
        bound = 1.0 / np.sqrt(fan_in)
        w = jax.random.uniform(kw, (1, 1, ksize, ksize, ksize), jnp.float32,
                               -bound, bound)
        b = jax.random.uniform(kb, (1,), jnp.float32, -bound, bound)
        return w, b

    keys = jax.random.split(key, 4 + 3 * folds)
    x = jax.random.normal(keys[0], (N, 1, D0, H0, W0), jnp.float32)

    w1, b1 = conv_params(keys[1], K1, K1 ** 3)
    w2 = jax.random.uniform(keys[2], (1, 1, 1, 1, 1), jnp.float32, -1.0, 1.0)
    alpha = jax.random.uniform(keys[3], (1,), jnp.float32, 0.0, 1e-5)

    blocks = []
    for i in range(folds):
        bw1, bb1 = conv_params(keys[4 + 3 * i], K1, K1 ** 3)
        bw2, bb2 = conv_params(keys[5 + 3 * i], K2, K2 ** 3)
        balpha = jax.random.uniform(keys[6 + 3 * i], (1,), jnp.float32,
                                    0.0, 1e-5)
        blocks.append(dict(w1=bw1, b1=bb1, w2=bw2, b2=bb2, alpha=balpha))

    params = dict(w1=w1, b1=b1, w2=w2, alpha=alpha, blocks=blocks)

    # Precompute the stacked bands / biases / alphas ONCE (outside the jitted
    # forward) -- for inference these are constants of the loaded parameters.
    H_up, W_up = H0 * scale_factor, W0 * scale_factor
    bands, biases, alphas = prepare_duulm_operands(params, H_up, W_up)
    bands = jax.block_until_ready(bands)

    out = duulm_forward(x, bands, biases, alphas,
                        scale=scale_factor, k1=K1, k2=K2)
    out = jax.block_until_ready(out)

    ref = jax.block_until_ready(duulm_reference(x, params, scale_factor))
    np.testing.assert_allclose(np.asarray(out), np.asarray(ref),
                               atol=5e-3, rtol=5e-3)

    print("KERNEL_OK")
</pallas_src>

<mosaic_0001>
module attributes {stable_mosaic.version = 11 : i64} {
  func.func @_duulm_fused_kernel(%arg0: i32, %arg1: i32, %arg2: memref<10xf32, #tpu.memory_space<smem>>, %arg3: memref<10xf32, #tpu.memory_space<smem>>, %arg4: memref<1x16x1920xf32, #tpu.memory_space<vmem>>, %arg5: memref<1x2560x128xf32, #tpu.memory_space<vmem>>, %arg6: memref<1x16x128xf32, #tpu.memory_space<vmem>>, %arg7: memref<16x128xf32, #tpu.memory_space<vmem>>, %arg8: memref<16x2560xf32, #tpu.memory_space<vmem>>, %arg9: memref<2x12x128xf32, #tpu.memory_space<vmem>>) attributes {dimension_semantics = [#tpu.dimension_semantics<parallel>, #tpu.dimension_semantics<arbitrary>], iteration_bounds = array<i64: 1, 10>, scalar_prefetch = 0 : i64, scratch_operands = 3 : i64, tpu.core_type = #tpu.core_type<tc>, window_params = [{transform_indices = @transform_0, window_bounds = array<i64: 10>}, {transform_indices = @transform_1, window_bounds = array<i64: 10>}, {transform_indices = @transform_2, window_bounds = array<i64: 1, 16, 1920>}, {transform_indices = @transform_3, window_bounds = array<i64: 1, 2560, 128>}, {transform_indices = @transform_4, window_bounds = array<i64: 1, 16, 128>}]} {
    %c0_i32 = arith.constant 0 : i32
    %0 = arith.cmpi eq, %arg1, %c0_i32 : i32
    %1 = arith.extui %0 : i1 to i32
    %c0_i32_0 = arith.constant 0 : i32
    %2 = arith.cmpi ne, %1, %c0_i32_0 : i32
    scf.if %2 {
      %cst_58 = arith.constant 0.000000e+00 : f32
      %68 = vector.broadcast %cst_58 : f32 to vector<16x128xf32>
      %c0_59 = arith.constant 0 : index
      %c0_60 = arith.constant 0 : index
      %69 = vector.load %arg7[%c0_59, %c0_60] : memref<16x128xf32, #tpu.memory_space<vmem>>, vector<16x128xf32>
      tpu.vector_store %arg7[%c0_59, %c0_60], %68 {strides = array<i32>} : memref<16x128xf32, #tpu.memory_space<vmem>>, vector<16x128xf32>,
      %c0_61 = arith.constant 0 : index
      %c0_62 = arith.constant 0 : index
      %c0_63 = arith.constant 0 : index
      %70 = vector.load %arg4[%c0_61, %c0_62, %c0_63] : memref<1x16x1920xf32, #tpu.memory_space<vmem>>, vector<1x16x1920xf32>
      %71 = vector.shape_cast %70 : vector<1x16x1920xf32> to vector<16x1920xf32>
      %c0_64 = arith.constant 0 : index
      %c0_65 = arith.constant 0 : index
      %72 = vector.load %arg8[%c0_64, %c0_65] : memref<16x2560xf32, #tpu.memory_space<vmem>>, vector<16x1920xf32>
      tpu.vector_store %arg8[%c0_64, %c0_65], %71 {strides = array<i32>} : memref<16x2560xf32, #tpu.memory_space<vmem>>, vector<16x1920xf32>,
      %cst_66 = arith.constant 0.000000e+00 : f32
      %73 = vector.broadcast %cst_66 : f32 to vector<2x12x128xf32>
      %c0_67 = arith.constant 0 : index
      %c0_68 = arith.constant 0 : index
      %c0_69 = arith.constant 0 : index
      %74 = vector.load %arg9[%c0_67, %c0_68, %c0_69] : memref<2x12x128xf32, #tpu.memory_space<vmem>>, vector<2x12x128xf32>
      tpu.vector_store %arg9[%c0_67, %c0_68, %c0_69], %73 {strides = array<i32>} : memref<2x12x128xf32, #tpu.memory_space<vmem>>, vector<2x12x128xf32>,
    } else {
    }
    %c0 = arith.constant 0 : index
    %c0_1 = arith.constant 0 : index
    %3 = vector.load %arg7[%c0, %c0_1] : memref<16x128xf32, #tpu.memory_space<vmem>>, vector<16x128xf32>
    %4 = arith.index_cast %arg1 : i32 to index
    %5 = memref.load %arg2[%4] : memref<10xf32, #tpu.memory_space<smem>>
    %6 = math.absf %3 : vector<16x128xf32>
    %7 = vector.broadcast %5 : f32 to vector<16x128xf32>
    %8 = arith.subf %6, %7 : vector<16x128xf32>
    %cst = arith.constant 0.000000e+00 : f32
    %9 = vector.broadcast %cst : f32 to vector<16x128xf32>
    %10 = arith.subf %9, %8 : vector<16x128xf32>
    %11 = math.exp %10 : vector<16x128xf32>
    %cst_2 = arith.constant 1.000000e+00 : f32
    %12 = vector.broadcast %cst_2 : f32 to vector<16x128xf32>
    %13 = arith.addf %12, %11 : vector<16x128xf32>
    %14 = tpu.reciprocal %13 {approx = true} : vector<16x128xf32> -> vector<16x128xf32>
    %15 = arith.mulf %3, %14 : vector<16x128xf32>
    %16 = vector.extract_strided_slice %15 {offsets = [0, 0], sizes = [8, 128], strides = [1, 1]} : vector<16x128xf32> to vector<8x128xf32>
    %c0_3 = arith.constant 0 : index
    %c2 = arith.constant 2 : index
    %c0_4 = arith.constant 0 : index
    %17 = vector.load %arg9[%c0_3, %c2, %c0_4] : memref<2x12x128xf32, #tpu.memory_space<vmem>>, vector<1x8x128xf32>
    %18 = vector.shape_cast %17 : vector<1x8x128xf32> to vector<8x128xf32>
    %19 = vector.shape_cast %16 : vector<8x128xf32> to vector<1x8x128xf32>
    tpu.vector_store %arg9[%c0_3, %c2, %c0_4], %19 {strides = array<i32>} : memref<2x12x128xf32, #tpu.memory_space<vmem>>, vector<1x8x128xf32>,
    %20 = vector.extract_strided_slice %15 {offsets = [8, 0], sizes = [8, 128], strides = [1, 1]} : vector<16x128xf32> to vector<8x128xf32>
    %c1 = arith.constant 1 : index
    %c2_5 = arith.constant 2 : index
    %c0_6 = arith.constant 0 : index
    %21 = vector.load %arg9[%c1, %c2_5, %c0_6] : memref<2x12x128xf32, #tpu.memory_space<vmem>>, vector<1x8x128xf32>
    %22 = vector.shape_cast %21 : vector<1x8x128xf32> to vector<8x128xf32>
    %23 = vector.shape_cast %20 : vector<8x128xf32> to vector<1x8x128xf32>
    tpu.vector_store %arg9[%c1, %c2_5, %c0_6], %23 {strides = array<i32>} : memref<2x12x128xf32, #tpu.memory_space<vmem>>, vector<1x8x128xf32>,
    %c0_7 = arith.constant 0 : index
    %c0_8 = arith.constant 0 : index
    %c0_9 = arith.constant 0 : index
    %24 = vector.load %arg9[%c0_7, %c0_8, %c0_9] : memref<2x12x128xf32, #tpu.memory_space<vmem>>, vector<1x8x128xf32>
    %25 = vector.shape_cast %24 : vector<1x8x128xf32> to vector<8x128xf32>
    %c0_10 = arith.constant 0 : index
    %c1920 = arith.constant 1920 : index
    %26 = vector.load %arg8[%c0_10, %c1920] : memref<16x2560xf32, #tpu.memory_space<vmem>>, vector<8x128xf32>
    tpu.vector_store %arg8[%c0_10, %c1920], %25 {strides = array<i32>} : memref<16x2560xf32, #tpu.memory_space<vmem>>, vector<8x128xf32>,
    %c0_11 = arith.constant 0 : index
    %c1_12 = arith.constant 1 : index
    %c0_13 = arith.constant 0 : index
    %27 = vector.load %arg9[%c0_11, %c1_12, %c0_13] : memref<2x12x128xf32, #tpu.memory_space<vmem>>, vector<1x8x128xf32>
    %28 = vector.shape_cast %27 : vector<1x8x128xf32> to vector<8x128xf32>
    %c0_14 = arith.constant 0 : index
    %c2048 = arith.constant 2048 : index
    %29 = vector.load %arg8[%c0_14, %c2048] : memref<16x2560xf32, #tpu.memory_space<vmem>>, vector<8x128xf32>
    tpu.vector_store %arg8[%c0_14, %c2048], %28 {strides = array<i32>} : memref<16x2560xf32, #tpu.memory_space<vmem>>, vector<8x128xf32>,
    %c0_15 = arith.constant 0 : index
    %c2_16 = arith.constant 2 : index
    %c0_17 = arith.constant 0 : index
    %30 = vector.load %arg9[%c0_15, %c2_16, %c0_17] : memref<2x12x128xf32, #tpu.memory_space<vmem>>, vector<1x8x128xf32>
    %31 = vector.shape_cast %30 : vector<1x8x128xf32> to vector<8x128xf32>
    %c0_18 = arith.constant 0 : index
    %c2176 = arith.constant 2176 : index
    %32 = vector.load %arg8[%c0_18, %c2176] : memref<16x2560xf32, #tpu.memory_space<vmem>>, vector<8x128xf32>
    tpu.vector_store %arg8[%c0_18, %c2176], %31 {strides = array<i32>} : memref<16x2560xf32, #tpu.memory_space<vmem>>, vector<8x128xf32>,
    %c0_19 = arith.constant 0 : index
    %c3 = arith.constant 3 : index
    %c0_20 = arith.constant 0 : index
    %33 = vector.load %arg9[%c0_19, %c3, %c0_20] : memref<2x12x128xf32, #tpu.memory_space<vmem>>, vector<1x8x128xf32>
    %34 = vector.shape_cast %33 : vector<1x8x128xf32> to vector<8x128xf32>
    %c0_21 = arith.constant 0 : index
    %c2304 = arith.constant 2304 : index
    %35 = vector.load %arg8[%c0_21, %c2304] : memref<16x2560xf32, #tpu.memory_space<vmem>>, vector<8x128xf32>
    tpu.vector_store %arg8[%c0_21, %c2304], %34 {strides = array<i32>} : memref<16x2560xf32, #tpu.memory_space<vmem>>, vector<8x128xf32>,
    %c0_22 = arith.constant 0 : index
    %c4 = arith.constant 4 : index
    %c0_23 = arith.constant 0 : index
    %36 = vector.load %arg9[%c0_22, %c4, %c0_23] : memref<2x12x128xf32, #tpu.memory_space<vmem>>, vector<1x8x128xf32>
    %37 = vector.shape_cast %36 : vector<1x8x128xf32> to vector<8x128xf32>
    %c0_24 = arith.constant 0 : index
    %c2432 = arith.constant 2432 : index
    %38 = vector.load %arg8[%c0_24, %c2432] : memref<16x2560xf32, #tpu.memory_space<vmem>>, vector<8x128xf32>
    tpu.vector_store %arg8[%c0_24, %c2432], %37 {strides = array<i32>} : memref<16x2560xf32, #tpu.memory_space<vmem>>, vector<8x128xf32>,
    %c1_25 = arith.constant 1 : index
    %c0_26 = arith.constant 0 : index
    %c0_27 = arith.constant 0 : index
    %39 = vector.load %arg9[%c1_25, %c0_26, %c0_27] : memref<2x12x128xf32, #tpu.memory_space<vmem>>, vector<1x8x128xf32>
    %40 = vector.shape_cast %39 : vector<1x8x128xf32> to vector<8x128xf32>
    %c8 = arith.constant 8 : index
    %c1920_28 = arith.constant 1920 : index
    %41 = vector.load %arg8[%c8, %c1920_28] : memref<16x2560xf32, #tpu.memory_space<vmem>>, vector<8x128xf32>
    tpu.vector_store %arg8[%c8, %c1920_28], %40 {strides = array<i32>} : memref<16x2560xf32, #tpu.memory_space<vmem>>, vector<8x128xf32>,
    %c1_29 = arith.constant 1 : index
    %c1_30 = arith.constant 1 : index
    %c0_31 = arith.constant 0 : index
    %42 = vector.load %arg9[%c1_29, %c1_30, %c0_31] : memref<2x12x128xf32, #tpu.memory_space<vmem>>, vector<1x8x128xf32>
    %43 = vector.shape_cast %42 : vector<1x8x128xf32> to vector<8x128xf32>
    %c8_32 = arith.constant 8 : index
    %c2048_33 = arith.constant 2048 : index
    %44 = vector.load %arg8[%c8_32, %c2048_33] : memref<16x2560xf32, #tpu.memory_space<vmem>>, vector<8x128xf32>
    tpu.vector_store %arg8[%c8_32, %c2048_33], %43 {strides = array<i32>} : memref<16x2560xf32, #tpu.memory_space<vmem>>, vector<8x128xf32>,
    %c1_34 = arith.constant 1 : index
    %c2_35 = arith.constant 2 : index
    %c0_36 = arith.constant 0 : index
    %45 = vector.load %arg9[%c1_34, %c2_35, %c0_36] : memref<2x12x128xf32, #tpu.memory_space<vmem>>, vector<1x8x128xf32>
    %46 = vector.shape_cast %45 : vector<1x8x128xf32> to vector<8x128xf32>
    %c8_37 = arith.constant 8 : index
    %c2176_38 = arith.constant 2176 : index
    %47 = vector.load %arg8[%c8_37, %c2176_38] : memref<16x2560xf32, #tpu.memory_space<vmem>>, vector<8x128xf32>
    tpu.vector_store %arg8[%c8_37, %c2176_38], %46 {strides = array<i32>} : memref<16x2560xf32, #tpu.memory_space<vmem>>, vector<8x128xf32>,
    %c1_39 = arith.constant 1 : index
    %c3_40 = arith.constant 3 : index
    %c0_41 = arith.constant 0 : index
    %48 = vector.load %arg9[%c1_39, %c3_40, %c0_41] : memref<2x12x128xf32, #tpu.memory_space<vmem>>, vector<1x8x128xf32>
    %49 = vector.shape_cast %48 : vector<1x8x128xf32> to vector<8x128xf32>
    %c8_42 = arith.constant 8 : index
    %c2304_43 = arith.constant 2304 : index
    %50 = vector.load %arg8[%c8_42, %c2304_43] : memref<16x2560xf32, #tpu.memory_space<vmem>>, vector<8x128xf32>
    tpu.vector_store %arg8[%c8_42, %c2304_43], %49 {strides = array<i32>} : memref<16x2560xf32, #tpu.memory_space<vmem>>, vector<8x128xf32>,
    %c1_44 = arith.constant 1 : index
    %c4_45 = arith.constant 4 : index
    %c0_46 = arith.constant 0 : index
    %51 = vector.load %arg9[%c1_44, %c4_45, %c0_46] : memref<2x12x128xf32, #tpu.memory_space<vmem>>, vector<1x8x128xf32>
    %52 = vector.shape_cast %51 : vector<1x8x128xf32> to vector<8x128xf32>
    %c8_47 = arith.constant 8 : index
    %c2432_48 = arith.constant 2432 : index
    %53 = vector.load %arg8[%c8_47, %c2432_48] : memref<16x2560xf32, #tpu.memory_space<vmem>>, vector<8x128xf32>
    tpu.vector_store %arg8[%c8_47, %c2432_48], %52 {strides = array<i32>} : memref<16x2560xf32, #tpu.memory_space<vmem>>, vector<8x128xf32>,
    %c0_49 = arith.constant 0 : index
    %c0_50 = arith.constant 0 : index
    %54 = vector.load %arg8[%c0_49, %c0_50] : memref<16x2560xf32, #tpu.memory_space<vmem>>, vector<16x2560xf32>
    %c0_51 = arith.constant 0 : index
    %c0_52 = arith.constant 0 : index
    %c0_53 = arith.constant 0 : index
    %55 = vector.load %arg5[%c0_51, %c0_52, %c0_53] : memref<1x2560x128xf32, #tpu.memory_space<vmem>>, vector<1x2560x128xf32>
    %56 = vector.shape_cast %55 : vector<1x2560x128xf32> to vector<2560x128xf32>
    %cst_54 = arith.constant dense<0.000000e+00> : vector<16x128xf32>
    %57 = tpu.matmul %54, %56, %cst_54 {dimension_numbers = #tpu.dot_dimension_numbers<[1], [0], [0], [1], [0, 0, 1, 1], [], []>} : vector<16x2560xf32>, vector<2560x128xf32>, vector<16x128xf32> -> vector<16x128xf32>
    %58 = arith.index_cast %arg1 : i32 to index
    %59 = memref.load %arg3[%58] : memref<10xf32, #tpu.memory_space<smem>>
    %60 = vector.broadcast %59 : f32 to vector<16x128xf32>
    %61 = arith.addf %57, %60 : vector<16x128xf32>
    %c9_i32 = arith.constant 9 : i32
    %62 = arith.cmpi slt, %arg1, %c9_i32 : i32
    %63 = arith.extui %62 : i1 to i32
    %c0_i32_55 = arith.constant 0 : i32
    %64 = arith.cmpi ne, %63, %c0_i32_55 : i32
    scf.if %64 {
      %c0_58 = arith.constant 0 : index
      %c0_59 = arith.constant 0 : index
      %68 = vector.load %arg7[%c0_58, %c0_59] : memref<16x128xf32, #tpu.memory_space<vmem>>, vector<16x128xf32>
      tpu.vector_store %arg7[%c0_58, %c0_59], %61 {strides = array<i32>} : memref<16x128xf32, #tpu.memory_space<vmem>>, vector<16x128xf32>,
    } else {
    }
    %c9_i32_56 = arith.constant 9 : i32
    %65 = arith.cmpi eq, %arg1, %c9_i32_56 : i32
    %66 = arith.extui %65 : i1 to i32
    %c0_i32_57 = arith.constant 0 : i32
    %67 = arith.cmpi ne, %66, %c0_i32_57 : i32
    scf.if %67 {
      %c0_58 = arith.constant 0 : index
      %c0_59 = arith.constant 0 : index
      %c0_60 = arith.constant 0 : index
      %68 = vector.load %arg6[%c0_58, %c0_59, %c0_60] : memref<1x16x128xf32, #tpu.memory_space<vmem>>, vector<1x16x128xf32>
      %69 = vector.shape_cast %68 : vector<1x16x128xf32> to vector<16x128xf32>
      %70 = vector.shape_cast %61 : vector<16x128xf32> to vector<1x16x128xf32>
      tpu.vector_store %arg6[%c0_58, %c0_59, %c0_60], %70 {strides = array<i32>} : memref<1x16x128xf32, #tpu.memory_space<vmem>>, vector<1x16x128xf32>,
    } else {
    }
    return
  }
  func.func @transform_0(%arg0: i32, %arg1: i32) -> i32 {
    %c0_i32 = arith.constant 0 : i32
    %c0_i32_0 = arith.constant 0 : i32
    return %c0_i32 : i32
  }
  func.func @transform_1(%arg0: i32, %arg1: i32) -> i32 {
    %c0_i32 = arith.constant 0 : i32
    %c0_i32_0 = arith.constant 0 : i32
    return %c0_i32 : i32
  }
  func.func @transform_2(%arg0: i32, %arg1: i32) -> (i32, i32, i32) {
    %c0_i32 = arith.constant 0 : i32
    %c0_i32_0 = arith.constant 0 : i32
    %c0_i32_1 = arith.constant 0 : i32
    return %arg0, %c0_i32, %c0_i32_0 : i32, i32, i32
  }
  func.func @transform_3(%arg0: i32, %arg1: i32) -> (i32, i32, i32) {
    %c0_i32 = arith.constant 0 : i32
    %c0_i32_0 = arith.constant 0 : i32
    %c0_i32_1 = arith.constant 0 : i32
    return %arg1, %c0_i32, %c0_i32_0 : i32, i32, i32
  }
  func.func @transform_4(%arg0: i32, %arg1: i32) -> (i32, i32, i32) {
    %c0_i32 = arith.constant 0 : i32
    %c0_i32_0 = arith.constant 0 : i32
    %c0_i32_1 = arith.constant 0 : i32
    return %arg0, %c0_i32, %c0_i32_0 : i32, i32, i32
  }
}

</mosaic_0001>

<bundles_post_ra>
// kernel: duulm_forward.1
= control target key start
LH: loop header
LB: loop body
LE: loop exit
PB: predicated region body
PF: predicated region fallthrough
CT: control target
= control target key end

     0   :  { %9 = vsyncpa [#allocation7], 0  ;;  %s2172_s0 = inlined_call_operand.hbm [shape: f32[10], index: 0, kind: input, shape index: {}]   ;;  %s2173_s1 = inlined_call_operand.hbm [shape: f32[10], index: 1, kind: input, shape index: {}]   ;;  %s2174_s2 = inlined_call_operand.vmem [shape: f32[1,16,1920], index: 2, kind: input, shape index: {}]   ;;  %s2175_s3 = inlined_call_operand.hbm [shape: f32[10,2560,128], index: 3, kind: input, shape index: {}]   ;;  %s2176_s4 = inlined_call_operand.vmem [shape: f32[1,16,128], index: 4, kind: output, shape index: {}]  }
   0x1   :  { %10 = vsyncpa [#allocation9], 0 }
   0x2   :  { %11 = vsyncpa [#allocation6], 0 }
   0x3   :  { %13 = vsyncpa [#allocation6 + $0x1], 0  ;;  %s1591_s15 = smov 0   ;;  %s1593_s16 = smov 0  }
   0x4   :  { %s1595_s17 = smov 0   ;;  %s1597_s18 = smov 0  }
   0x5   :  { %s1599_s19 = smov 0   ;;  %s1601_s20 = smov 0  }
   0x6 LB: > { %s1335_s21 = sadd.s32 4294967295, %s1559_s20   ;;  %s106_s22 = sadd.s32 1, %s1547_s17  ;;  %s1559_s20 = sphi %s1601_s20, %s19_s20   ;;  %s1555_s19 = sphi %s1599_s19, %s2185_s19   ;;  %s1551_s18 = sphi %s1597_s18, %s2184_s18   ;;  %s1547_s17 = sphi %s1595_s17, %s2183_s17   ;;  %s1543_s16 = sphi %s1593_s16, %s2182_s16   ;;  %s1539_s15 = sphi %s1591_s15, %s2181_s15  }
   0x7   : > { %p113_p0 = scmp.ne.s32.totalorder %s1547_s17, %s1543_s16  ;;  %p114_p1 = scmp.eq.s32.totalorder %s1559_s20, 0 }
   0x8   : > { %p119_p2 = scmp.ne.s32.totalorder %s1543_s16, %s1539_s15  ;;  %p1625_p3 = scmp.eq.s32.totalorder %s1335_s21, 0 }
   0x9   : > { %p115_p4 = por %p114_p1, %p113_p0  ;;  %p1336_p5 = scmp.ge.s32.totalorder %s1559_s20, 1 }
   0xa   : > { %p1632_p6 = por %p1625_p3, %p119_p2  ;;  %p156_p7 = scmp.lt.s32.totalorder %s1559_s20, 11 }
   0xb   : > { %s168_s27 = sshll.u32 %s2172_s0, 4  ;;  %p1377_p10 = scmp.lt.s32.totalorder %s1559_s20, 10  ;;  %s169_s27 = int_to_ptr.hbm [resolvable:$true] %s168_s27 }
   0xc   : > { %p1640_p8 = pnand %p1336_p5, %p156_p7  ;;  %s178_s5 = sshll.u32 %s2173_s1, 4  ;;  %s179_s5 = int_to_ptr.hbm [resolvable:$true] %s178_s5 }
   0xd   : > { %p1652_p12 = pnand %p1377_p10, %p115_p4  ;;  %s1561_s7 = smov [#allocation5]  }
   0xe   : > { %p1364_p9 = pneg %p1640_p8  ;;  %s1562_s8 = smov [#allocation8]  }
   0xf   : > { %s197_s9 = sand.u32 1, %s1547_s17   ;;  %s28_s10 = sadd.s32 1, %s1555_s19 }
  0x10   : > { %p1365_p11 = pnand %p1364_p9, %p1625_p3  ;;  %p29_p13 = scmp.ge.s32.totalorder %s28_s10, 10 }
  0x11   : > { %s1351_s11 = smul.u32 2560, %s197_s9  ;;  %s198_s30 = scalar_lea.sflag [#allocation6], %s197_s9 }
  0x12   : > { %1367 = dma.hbm_to_smem (!%p1365_p11), %s169_s27, 16, %s1561_s7, [#allocation7]  }
  0x13   : > { %1370 = dma.hbm_to_smem (!%p1365_p11), %s179_s5, 16, %s1562_s8, [#allocation9]  }
  0x14   : > { %s1352_s12 = smul.u32 2560, %s1555_s19  ;;  %s2187_s10 = smov (%p29_p13, %s28_s10), 0 }
  0x15   : > { %s103_s21 = ssub.s32 %s1555_s19, %s2187_s10  ;;  %s201_s26 = scalar_lea.vmem [#allocation10], %s1351_s11 }
  0x16   : > { %s206_s15 = scalar_lea.hbm %s2175_s3, %s1352_s12  ;;  %p104_p0 = scmp.eq.s32.totalorder %s103_s21, 0 }
  0x17   : > { %s207_s25 = sshll.u32 %s206_s15, 4  ;;  %s209_s27 = sshll.u32 %s201_s26, 4  ;;  %s208_s25 = int_to_ptr.hbm [resolvable:$true] %s207_s25  ;;  %s210_s27 = int_to_ptr.vmem [resolvable:$true] %s209_s27 }
  0x18   : > { %s1669_s29 = scalar_select %p104_p0, %s1547_s17, %s106_s22  }
  0x19   : > { %s1563_s5 = smov 128   ;;  %s1564_s7 = smov 8  }
  0x1a   : > { %1374 = dma.hbm_to_vmem [thread:$0]  (!%p1652_p12), %s208_s25, 40960, %s210_s27, %s198_s30, %s1563_s5, %s1563_s5, %s1564_s7  }
  0x1b   : > { %221 = sbr.rel (%p1640_p8) target bundleno = 417 (0x1a1), region = 36 }
  0x20   : > { %1526 = dma.done.wait (%p1625_p3), [#allocation7], 16  }
  0x21   : > { %1528 = vsyncadd (%p1625_p3), [#allocation7], 4294967280 }
  0x22   : > { %1530 = dma.done.wait (%p1625_p3), [#allocation9], 16  }
  0x23   : > { %1532 = vsyncadd (%p1625_p3), [#allocation9], 4294967280  ;;  %s233_s22 = sand.u32 1, %s1543_s16  }
  0x24   : > { %s1353_s6 = smul.u32 2560, %s233_s22  ;;  %s234_s8 = scalar_lea.sflag [#allocation6], %s233_s22 }
  0x26   : > { %s1684_s9 = scalar_lea.vmem [#allocation10], %s1353_s6 }
  0x27   : > { %1534 = dma.done.wait (%p1632_p6), %s234_s8, 40960  }
  0x28   : > { %1536 = vsyncadd (%p1632_p6), %s234_s8, 4294926336 }
  0x29   : > { %243 = sfence }
  0x2a   : > { %p1345_p1 = scmp.ne.s32.totalorder %s1551_s18, 0 }
  0x2c   : > { %282 = sbr.rel (%p1345_p1) target bundleno = 86 (0x56), region = 52 }
  0x31   : > { %v1565_v0 = vmov 0.0   ;;  %v285_v1 = vld [vmem:[%s2174_s2] sm:$0xff]  ;;  %v286_v2 = vld [vmem:[%s2174_s2 + $0x8] sm:$0xff]  ;;  %v287_v3 = vld [vmem:[%s2174_s2 + $0x10] sm:$0xff] }
  0x32   : > { %283 = vst [vmem:[#allocation2] sm:$0xff] %v1565_v0  ;;  %v288_v4 = vld [vmem:[%s2174_s2 + $0x18] sm:$0xff]  ;;  %v289_v5 = vld [vmem:[%s2174_s2 + $0x20] sm:$0xff]  ;;  %v290_v6 = vld [vmem:[%s2174_s2 + $0x28] sm:$0xff] }
  0x33   : > { %284 = vst [vmem:[#allocation2 + $0x8] sm:$0xff] %v1565_v0  ;;  %v291_v7 = vld [vmem:[%s2174_s2 + $0x30] sm:$0xff]  ;;  %v292_v8 = vld [vmem:[%s2174_s2 + $0x38] sm:$0xff]  ;;  %v293_v9 = vld [vmem:[%s2174_s2 + $0x40] sm:$0xff] }
  0x34   : > { %345 = vst [vmem:[#allocation4] sm:$0xff] %v1565_v0  ;;  %v294_v10 = vld [vmem:[%s2174_s2 + $0x48] sm:$0xff]  ;;  %v295_v11 = vld [vmem:[%s2174_s2 + $0x50] sm:$0xff]  ;;  %v296_v12 = vld [vmem:[%s2174_s2 + $0x58] sm:$0xff] }
  0x35   : > { %346 = vst [vmem:[#allocation4 + $0x8] sm:$0xf] %v1565_v0  ;;  %v297_v13 = vld [vmem:[%s2174_s2 + $0x60] sm:$0xff]  ;;  %v298_v14 = vld [vmem:[%s2174_s2 + $0x68] sm:$0xff]  ;;  %v299_v15 = vld [vmem:[%s2174_s2 + $0x70] sm:$0xff] }
  0x36   : > { %347 = vst [vmem:[#allocation4 + $0x10] sm:$0xff] %v1565_v0  ;;  %v300_v16 = vld [vmem:[%s2174_s2 + $0x78] sm:$0xff]  ;;  %v301_v17 = vld [vmem:[%s2174_s2 + $0x80] sm:$0xff]  ;;  %v302_v18 = vld [vmem:[%s2174_s2 + $0x88] sm:$0xff] }
  0x37   : > { %348 = vst [vmem:[#allocation4 + $0x18] sm:$0xf] %v1565_v0  ;;  %v303_v19 = vld [vmem:[%s2174_s2 + $0x90] sm:$0xff]  ;;  %v304_v20 = vld [vmem:[%s2174_s2 + $0x98] sm:$0xff]  ;;  %v305_v21 = vld [vmem:[%s2174_s2 + $0xa0] sm:$0xff] }
  0x38   : > { %315 = vst [vmem:[#allocation3 + $0xf0] sm:$0xff] %v285_v1  ;;  %v306_v22 = vld [vmem:[%s2174_s2 + $0xa8] sm:$0xff]  ;;  %v307_v23 = vld [vmem:[%s2174_s2 + $0xb0] sm:$0xff]  ;;  %v308_v24 = vld [vmem:[%s2174_s2 + $0xb8] sm:$0xff] }
  0x39   : > { %316 = vst [vmem:[#allocation3 + $0x8] sm:$0xff] %v286_v2  ;;  %v309_v25 = vld [vmem:[%s2174_s2 + $0xc0] sm:$0xff]  ;;  %v310_v26 = vld [vmem:[%s2174_s2 + $0xc8] sm:$0xff]  ;;  %v311_v27 = vld [vmem:[%s2174_s2 + $0xd0] sm:$0xff] }
  0x3a   : > { %317 = vst [vmem:[#allocation3 + $0x40] sm:$0xff] %v287_v3  ;;  %v312_v28 = vld [vmem:[%s2174_s2 + $0xd8] sm:$0xff]  ;;  %v313_v29 = vld [vmem:[%s2174_s2 + $0xe0] sm:$0xff]  ;;  %v314_v30 = vld [vmem:[%s2174_s2 + $0xe8] sm:$0xff] }
  0x3b   : > { %318 = vst [vmem:[#allocation3 + $0x118] sm:$0xff] %v288_v4 }
  0x3c   : > { %319 = vst [vmem:[#allocation3 + $0x30] sm:$0xff] %v289_v5 }
  0x3d   : > { %320 = vst [vmem:[#allocation3 + $0x78] sm:$0xff] %v290_v6 }
  0x3e   : > { %321 = vst [vmem:[#allocation3 + $0x80] sm:$0xff] %v291_v7 }
  0x3f   : > { %322 = vst [vmem:[#allocation3 + $0xa0] sm:$0xff] %v292_v8 }
  0x40   : > { %323 = vst [vmem:[#allocation3 + $0x88] sm:$0xff] %v293_v9 }
  0x41   : > { %324 = vst [vmem:[#allocation3 + $0x130] sm:$0xff] %v294_v10 }
  0x42   : > { %325 = vst [vmem:[#allocation3 + $0x110] sm:$0xff] %v295_v11 }
  0x43   : > { %326 = vst [vmem:[#allocation3 + $0x10] sm:$0xff] %v296_v12 }
  0x44   : > { %327 = vst [vmem:[#allocation3 + $0xe8] sm:$0xff] %v297_v13 }
  0x45   : > { %328 = vst [vmem:[#allocation3 + $0x68] sm:$0xff] %v298_v14 }
  0x46   : > { %329 = vst [vmem:[#allocation3 + $0x18] sm:$0xff] %v299_v15 }
  0x47   : > { %330 = vst [vmem:[#allocation3 + $0x120] sm:$0xff] %v300_v16 }
  0x48   : > { %331 = vst [vmem:[#allocation3 + $0x90] sm:$0xff] %v301_v17 }
  0x49   : > { %332 = vst [vmem:[#allocation3] sm:$0xff] %v302_v18 }
  0x4a   : > { %333 = vst [vmem:[#allocation3 + $0xb8] sm:$0xff] %v303_v19 }
  0x4b   : > { %334 = vst [vmem:[#allocation3 + $0xc8] sm:$0xff] %v304_v20 }
  0x4c   : > { %335 = vst [vmem:[#allocation3 + $0xb0] sm:$0xff] %v305_v21 }
  0x4d   : > { %336 = vst [vmem:[#allocation3 + $0x100] sm:$0xff] %v306_v22 }
  0x4e   : > { %337 = vst [vmem:[#allocation3 + $0xa8] sm:$0xff] %v307_v23 }
  0x4f   : > { %338 = vst [vmem:[#allocation3 + $0xe0] sm:$0xff] %v308_v24 }
  0x50   : > { %339 = vst [vmem:[#allocation3 + $0x98] sm:$0xff] %v309_v25 }
  0x51   : > { %340 = vst [vmem:[#allocation3 + $0xf8] sm:$0xff] %v310_v26 }
  0x52   : > { %341 = vst [vmem:[#allocation3 + $0xc0] sm:$0xff] %v311_v27 }
  0x53   : > { %342 = vst [vmem:[#allocation3 + $0x60] sm:$0xff] %v312_v28 }
  0x54   : > { %343 = vst [vmem:[#allocation3 + $0x128] sm:$0xff] %v313_v29 }
  0x55   : > { %344 = vst [vmem:[#allocation3 + $0x48] sm:$0xff] %v314_v30 }
  0x56 PF: > { %v447_v31 = vld [vmem:[%s1684_s9 + $0x78] sm:$0xff]  ;;  %v446_v33 = vld [vmem:[%s1684_s9 + $0x70] sm:$0xff]  ;;  %v445_v37 = vld [vmem:[%s1684_s9 + $0x68] sm:$0xff]  ;;  %s1920_s14 = sld [smem:[#allocation5 + %s1551_s18]]  ;;  %p1346_p2 = scmp.ge.s32.totalorder %s1551_s18, 9 }
  0x57   : > { %v479_v32 = vld [vmem:[%s1684_s9 + $0x178] sm:$0xff]  ;;  %754 = vmatpush.msra.mxu0 %v447_v31  ;;  %v478_v35 = vld [vmem:[%s1684_s9 + $0x170] sm:$0xff]  ;;  %v477_v39 = vld [vmem:[%s1684_s9 + $0x168] sm:$0xff] }
  0x58   : > { %800 = vmatpush.msra.mxu2 %v479_v32  ;;  %v463_v34 = vld [vmem:[%s1684_s9 + $0xf8] sm:$0xff]  ;;  %v462_v38 = vld [vmem:[%s1684_s9 + $0xf0] sm:$0xff]  ;;  %v461_v41 = vld [vmem:[%s1684_s9 + $0xe8] sm:$0xff] }
  0x59   : > { %v495_v36 = vld [vmem:[%s1684_s9 + $0x1f8] sm:$0xff]  ;;  %777 = vmatpush.msra.mxu1 %v463_v34  ;;  %755 = vmatpush.msra.mxu0 %v446_v33  ;;  %v494_v40 = vld [vmem:[%s1684_s9 + $0x1f0] sm:$0xff]  ;;  %v444_v42 = vld [vmem:[%s1684_s9 + $0x60] sm:$0xff] }
  0x5a   : > { %823 = vmatpush.msra.mxu3 %v495_v36  ;;  %801 = vmatpush.msra.mxu2 %v478_v35  ;;  %v476_v43 = vld [vmem:[%s1684_s9 + $0x160] sm:$0xff]  ;;  %v493_v44 = vld [vmem:[%s1684_s9 + $0x1e8] sm:$0xff]  ;;  %v443_v47 = vld [vmem:[%s1684_s9 + $0x58] sm:$0xff] }
  0x5b   : > { %778 = vmatpush.msra.mxu1 %v462_v38  ;;  %756 = vmatpush.msra.mxu0 %v445_v37  ;;  %v460_v45 = vld [vmem:[%s1684_s9 + $0xe0] sm:$0xff]  ;;  %v475_v48 = vld [vmem:[%s1684_s9 + $0x158] sm:$0xff]  ;;  %v442_v51 = vld [vmem:[%s1684_s9 + $0x50] sm:$0xff] }
  0x5c   : > { %824 = vmatpush.msra.mxu3 %v494_v40  ;;  %802 = vmatpush.msra.mxu2 %v477_v39  ;;  %v492_v46 = vld [vmem:[%s1684_s9 + $0x1e0] sm:$0xff]  ;;  %v459_v49 = vld [vmem:[%s1684_s9 + $0xd8] sm:$0xff]  ;;  %v474_v52 = vld [vmem:[%s1684_s9 + $0x150] sm:$0xff] }
  0x5d   : > { %779 = vmatpush.msra.mxu1 %v461_v41  ;;  %757 = vmatpush.msra.mxu0 %v444_v42  ;;  %v491_v50 = vld [vmem:[%s1684_s9 + $0x1d8] sm:$0xff]  ;;  %v458_v53 = vld [vmem:[%s1684_s9 + $0xd0] sm:$0xff]  ;;  %v441_v55 = vld [vmem:[%s1684_s9 + $0x48] sm:$0xff] }
  0x5e   : > { %825 = vmatpush.msra.mxu3 %v493_v44  ;;  %803 = vmatpush.msra.mxu2 %v476_v43  ;;  %v490_v54 = vld [vmem:[%s1684_s9 + $0x1d0] sm:$0xff]  ;;  %v473_v56 = vld [vmem:[%s1684_s9 + $0x148] sm:$0xff]  ;;  %v440_v59 = vld [vmem:[%s1684_s9 + $0x40] sm:$0xff] }
  0x5f   : > { %780 = vmatpush.msra.mxu1 %v460_v45  ;;  %758 = vmatpush.msra.mxu0 %v443_v47  ;;  %v457_v57 = vld [vmem:[%s1684_s9 + $0xc8] sm:$0xff]  ;;  %v472_v60 = vld [vmem:[%s1684_s9 + $0x140] sm:$0xff]  ;;  %v439_v63 = vld [vmem:[%s1684_s9 + $0x38] sm:$0xff] }
  0x60   : > { %826 = vmatpush.msra.mxu3 %v492_v46  ;;  %804 = vmatpush.msra.mxu2 %v475_v48  ;;  %v489_v58 = vld [vmem:[%s1684_s9 + $0x1c8] sm:$0xff]  ;;  %v456_v61 = vld [vmem:[%s1684_s9 + $0xc0] sm:$0xff]  ;;  %v471_v0 = vld [vmem:[%s1684_s9 + $0x138] sm:$0xff] }
  0x61   : > { %781 = vmatpush.msra.mxu1 %v459_v49  ;;  %759 = vmatpush.msra.mxu0 %v442_v51  ;;  %v488_v62 = vld [vmem:[%s1684_s9 + $0x1c0] sm:$0xff]  ;;  %v455_v1 = vld [vmem:[%s1684_s9 + $0xb8] sm:$0xff]  ;;  %v438_v3 = vld [vmem:[%s1684_s9 + $0x30] sm:$0xff] }
  0x62   : > { %827 = vmatpush.msra.mxu3 %v491_v50  ;;  %805 = vmatpush.msra.mxu2 %v474_v52  ;;  %v487_v2 = vld [vmem:[%s1684_s9 + $0x1b8] sm:$0xff]  ;;  %v470_v4 = vld [vmem:[%s1684_s9 + $0x130] sm:$0xff]  ;;  %v437_v7 = vld [vmem:[%s1684_s9 + $0x28] sm:$0xff] }
  0x63   : > { %782 = vmatpush.msra.mxu1 %v458_v53  ;;  %760 = vmatpush.msra.mxu0 %v441_v55  ;;  %v454_v5 = vld [vmem:[%s1684_s9 + $0xb0] sm:$0xff]  ;;  %v469_v8 = vld [vmem:[%s1684_s9 + $0x128] sm:$0xff]  ;;  %v436_v11 = vld [vmem:[%s1684_s9 + $0x20] sm:$0xff] }
  0x64   : > { %828 = vmatpush.msra.mxu3 %v490_v54  ;;  %806 = vmatpush.msra.mxu2 %v473_v56  ;;  %v486_v6 = vld [vmem:[%s1684_s9 + $0x1b0] sm:$0xff]  ;;  %v453_v9 = vld [vmem:[%s1684_s9 + $0xa8] sm:$0xff]  ;;  %v468_v12 = vld [vmem:[%s1684_s9 + $0x120] sm:$0xff] }
  0x65   : > { %783 = vmatpush.msra.mxu1 %v457_v57  ;;  %761 = vmatpush.msra.mxu0 %v440_v59  ;;  %v485_v10 = vld [vmem:[%s1684_s9 + $0x1a8] sm:$0xff]  ;;  %v452_v13 = vld [vmem:[%s1684_s9 + $0xa0] sm:$0xff]  ;;  %v435_v15 = vld [vmem:[%s1684_s9 + $0x18] sm:$0xff] }
  0x66   : > { %829 = vmatpush.msra.mxu3 %v489_v58  ;;  %807 = vmatpush.msra.mxu2 %v472_v60  ;;  %v484_v14 = vld [vmem:[%s1684_s9 + $0x1a0] sm:$0xff]  ;;  %v467_v16 = vld [vmem:[%s1684_s9 + $0x118] sm:$0xff]  ;;  %v434_v19 = vld [vmem:[%s1684_s9 + $0x10] sm:$0xff] }
  0x67   : > { %784 = vmatpush.msra.mxu1 %v456_v61  ;;  %762 = vmatpush.msra.mxu0 %v439_v63  ;;  %v451_v17 = vld [vmem:[%s1684_s9 + $0x98] sm:$0xff]  ;;  %v466_v20 = vld [vmem:[%s1684_s9 + $0x110] sm:$0xff]  ;;  %v433_v23 = vld [vmem:[%s1684_s9 + $0x8] sm:$0xff] }
  0x68   : > { %830 = vmatpush.msra.mxu3 %v488_v62  ;;  %808 = vmatpush.msra.mxu2 %v471_v0  ;;  %v483_v18 = vld [vmem:[%s1684_s9 + $0x198] sm:$0xff]  ;;  %v450_v21 = vld [vmem:[%s1684_s9 + $0x90] sm:$0xff]  ;;  %v465_v24 = vld [vmem:[%s1684_s9 + $0x108] sm:$0xff] }
  0x69   : > { %785 = vmatpush.msra.mxu1 %v455_v1  ;;  %763 = vmatpush.msra.mxu0 %v438_v3  ;;  %v482_v22 = vld [vmem:[%s1684_s9 + $0x190] sm:$0xff]  ;;  %v449_v25 = vld [vmem:[%s1684_s9 + $0x88] sm:$0xff]  ;;  %v432_v27 = vld [vmem:[%s1684_s9] sm:$0xff] }
  0x6a   : > { %831 = vmatpush.msra.mxu3 %v487_v2  ;;  %809 = vmatpush.msra.mxu2 %v470_v4  ;;  %v481_v26 = vld [vmem:[%s1684_s9 + $0x188] sm:$0xff]  ;;  %v464_v28 = vld [vmem:[%s1684_s9 + $0x100] sm:$0xff]  ;;  %v511_v29 = vld [vmem:[%s1684_s9 + $0x278] sm:$0xff] }
  0x6b   : > { %786 = vmatpush.msra.mxu1 %v454_v5  ;;  %764 = vmatpush.msra.mxu0 %v437_v7  ;;  %v543_v30 = vld [vmem:[%s1684_s9 + $0x378] sm:$0xff]  ;;  %v448_v31 = vld [vmem:[%s1684_s9 + $0x80] sm:$0xff]  ;;  %v510_v33 = vld [vmem:[%s1684_s9 + $0x270] sm:$0xff] }
  0x6c   : > { %832 = vmatpush.msra.mxu3 %v486_v6  ;;  %810 = vmatpush.msra.mxu2 %v469_v8  ;;  %v480_v32 = vld [vmem:[%s1684_s9 + $0x180] sm:$0xff]  ;;  %v527_v34 = vld [vmem:[%s1684_s9 + $0x2f8] sm:$0xff]  ;;  %v542_v35 = vld [vmem:[%s1684_s9 + $0x370] sm:$0xff] }
  0x6d   : > { %787 = vmatpush.msra.mxu1 %v453_v9  ;;  %765 = vmatpush.msra.mxu0 %v436_v11  ;;  %v559_v36 = vld [vmem:[%s1684_s9 + $0x3f8] sm:$0xff]  ;;  %v509_v37 = vld [vmem:[%s1684_s9 + $0x268] sm:$0xff]  ;;  %v526_v38 = vld [vmem:[%s1684_s9 + $0x2f0] sm:$0xff] }
  0x6e   : > { %833 = vmatpush.msra.mxu3 %v485_v10  ;;  %811 = vmatpush.msra.mxu2 %v468_v12  ;;  %v541_v39 = vld [vmem:[%s1684_s9 + $0x368] sm:$0xff]  ;;  %v558_v40 = vld [vmem:[%s1684_s9 + $0x3f0] sm:$0xff]  ;;  %v508_v41 = vld [vmem:[%s1684_s9 + $0x260] sm:$0xff] }
  0x6f   : > { %788 = vmatpush.msra.mxu1 %v452_v13  ;;  %766 = vmatpush.msra.mxu0 %v435_v15  ;;  %v525_v42 = vld [vmem:[%s1684_s9 + $0x2e8] sm:$0xff]  ;;  %v540_v43 = vld [vmem:[%s1684_s9 + $0x360] sm:$0xff]  ;;  %v507_v45 = vld [vmem:[%s1684_s9 + $0x258] sm:$0xff] }
  0x70   : > { %834 = vmatpush.msra.mxu3 %v484_v14  ;;  %812 = vmatpush.msra.mxu2 %v467_v16  ;;  %v557_v44 = vld [vmem:[%s1684_s9 + $0x3e8] sm:$0xff]  ;;  %v524_v46 = vld [vmem:[%s1684_s9 + $0x2e0] sm:$0xff]  ;;  %v539_v47 = vld [vmem:[%s1684_s9 + $0x358] sm:$0xff] }
  0x71   : > { %789 = vmatpush.msra.mxu1 %v451_v17  ;;  %767 = vmatpush.msra.mxu0 %v434_v19  ;;  %v556_v48 = vld [vmem:[%s1684_s9 + $0x3e0] sm:$0xff]  ;;  %v506_v49 = vld [vmem:[%s1684_s9 + $0x250] sm:$0xff]  ;;  %v523_v50 = vld [vmem:[%s1684_s9 + $0x2d8] sm:$0xff] }
  0x72   : > { %835 = vmatpush.msra.mxu3 %v483_v18  ;;  %813 = vmatpush.msra.mxu2 %v466_v20  ;;  %v538_v51 = vld [vmem:[%s1684_s9 + $0x350] sm:$0xff]  ;;  %v555_v52 = vld [vmem:[%s1684_s9 + $0x3d8] sm:$0xff]  ;;  %v505_v53 = vld [vmem:[%s1684_s9 + $0x248] sm:$0xff] }
  0x73   : > { %790 = vmatpush.msra.mxu1 %v450_v21  ;;  %768 = vmatpush.msra.mxu0 %v433_v23  ;;  %v522_v54 = vld [vmem:[%s1684_s9 + $0x2d0] sm:$0xff]  ;;  %v537_v55 = vld [vmem:[%s1684_s9 + $0x348] sm:$0xff]  ;;  %v504_v57 = vld [vmem:[%s1684_s9 + $0x240] sm:$0xff] }
  0x74   : > { %836 = vmatpush.msra.mxu3 %v482_v22  ;;  %814 = vmatpush.msra.mxu2 %v465_v24  ;;  %v554_v56 = vld [vmem:[%s1684_s9 + $0x3d0] sm:$0xff]  ;;  %v521_v58 = vld [vmem:[%s1684_s9 + $0x2c8] sm:$0xff]  ;;  %v536_v59 = vld [vmem:[%s1684_s9 + $0x340] sm:$0xff] }
  0x75   : > { %791 = vmatpush.msra.mxu1 %v449_v25  ;;  %769 = vmatpush.msra.mxu0 %v432_v27  ;;  %v553_v60 = vld [vmem:[%s1684_s9 + $0x3c8] sm:$0xff]  ;;  %v503_v61 = vld [vmem:[%s1684_s9 + $0x238] sm:$0xff]  ;;  %v520_v62 = vld [vmem:[%s1684_s9 + $0x2c0] sm:$0xff] }
  0x76   : > { %837 = vmatpush.msra.mxu3 %v481_v26  ;;  %815 = vmatpush.msra.mxu2 %v464_v28  ;;  %v535_v63 = vld [vmem:[%s1684_s9 + $0x338] sm:$0xff]  ;;  %v552_v0 = vld [vmem:[%s1684_s9 + $0x3c0] sm:$0xff]  ;;  %v502_v1 = vld [vmem:[%s1684_s9 + $0x230] sm:$0xff] }
  0x77   : > { %846 = vmatpush.msrb.mxu0 %v511_v29  ;;  %792 = vmatpush.msra.mxu1 %v448_v31  ;;  %v519_v2 = vld [vmem:[%s1684_s9 + $0x2b8] sm:$0xff]  ;;  %v534_v3 = vld [vmem:[%s1684_s9 + $0x330] sm:$0xff]  ;;  %v501_v5 = vld [vmem:[%s1684_s9 + $0x228] sm:$0xff] }
  0x78   : > { %892 = vmatpush.msrb.mxu2 %v543_v30  ;;  %838 = vmatpush.msra.mxu3 %v480_v32  ;;  %v551_v4 = vld [vmem:[%s1684_s9 + $0x3b8] sm:$0xff]  ;;  %v518_v6 = vld [vmem:[%s1684_s9 + $0x2b0] sm:$0xff]  ;;  %v533_v7 = vld [vmem:[%s1684_s9 + $0x328] sm:$0xff] }
  0x79   : > { %847 = vmatpush.msrb.mxu0 %v510_v33  ;;  %869 = vmatpush.msrb.mxu1 %v527_v34  ;;  %v550_v8 = vld [vmem:[%s1684_s9 + $0x3b0] sm:$0xff]  ;;  %v500_v9 = vld [vmem:[%s1684_s9 + $0x220] sm:$0xff]  ;;  %v517_v10 = vld [vmem:[%s1684_s9 + $0x2a8] sm:$0xff] }
  0x7a   : > { %893 = vmatpush.msrb.mxu2 %v542_v35  ;;  %915 = vmatpush.msrb.mxu3 %v559_v36  ;;  %v532_v11 = vld [vmem:[%s1684_s9 + $0x320] sm:$0xff]  ;;  %v549_v12 = vld [vmem:[%s1684_s9 + $0x3a8] sm:$0xff]  ;;  %v499_v14 = vld [vmem:[%s1684_s9 + $0x218] sm:$0xff] }
  0x7b   : > { %848 = vmatpush.msrb.mxu0 %v509_v37  ;;  %870 = vmatpush.msrb.mxu1 %v526_v38  ;;  %v394_v13 = vld [vmem:[#allocation3 + $0x40] sm:$0xff]  ;;  %v531_v16 = vld [vmem:[%s1684_s9 + $0x318] sm:$0xff]  ;;  %v392_v18 = vld [vmem:[#allocation3 + $0xf0] sm:$0xff] }
  0x7c   : > { %894 = vmatpush.msrb.mxu2 %v541_v39  ;;  %916 = vmatpush.msrb.mxu3 %v558_v40  ;;  %v516_v15 = vld [vmem:[%s1684_s9 + $0x2a0] sm:$0xff]  ;;  %v395_v19 = vld [vmem:[#allocation3 + $0x118] sm:$0xff]  ;;  %v498_v20 = vld [vmem:[%s1684_s9 + $0x210] sm:$0xff] }
  0x7d   : > { %849 = vmatpush.msrb.mxu0 %v508_v41  ;;  %871 = vmatpush.msrb.mxu1 %v525_v42  ;;  %v548_v17 = vld [vmem:[%s1684_s9 + $0x3a0] sm:$0xff]  ;;  %v515_v21 = vld [vmem:[%s1684_s9 + $0x298] sm:$0xff]  ;;  %v530_v22 = vld [vmem:[%s1684_s9 + $0x310] sm:$0xff] }
  0x7e   : > { %895 = vmatpush.msrb.mxu2 %v540_v43  ;;  %917 = vmatpush.msrb.mxu3 %v557_v44  ;;  %v547_v23 = vld [vmem:[%s1684_s9 + $0x398] sm:$0xff]  ;;  %v393_v24 = vld [vmem:[#allocation3 + $0x8] sm:$0xff]  ;;  %v514_v26 = vld [vmem:[%s1684_s9 + $0x290] sm:$0xff] }
  0x7f   : > { %850 = vmatpush.msrb.mxu0 %v507_v45  ;;  %872 = vmatpush.msrb.mxu1 %v524_v46  ;;  %v497_v25 = vld [vmem:[%s1684_s9 + $0x208] sm:$0xff]  ;;  %v546_v28 = vld [vmem:[%s1684_s9 + $0x390] sm:$0xff]  ;;  %v496_v29 = vld [vmem:[%s1684_s9 + $0x200] sm:$0xff] }
  0x80   : > { %896 = vmatpush.msrb.mxu2 %v539_v47  ;;  %918 = vmatpush.msrb.mxu3 %v556_v48  ;;  %v529_v27 = vld [vmem:[%s1684_s9 + $0x308] sm:$0xff]  ;;  %v528_v31 = vld [vmem:[%s1684_s9 + $0x300] sm:$0xff]  ;;  %v575_v34 = vld [vmem:[%s1684_s9 + $0x478] sm:$0xff] }
  0x81   : > { %851 = vmatpush.msrb.mxu0 %v506_v49  ;;  %873 = vmatpush.msrb.mxu1 %v523_v50  ;;  %v513_v30 = vld [vmem:[%s1684_s9 + $0x288] sm:$0xff]  ;;  %v414_v33 = vld [vmem:[#allocation3] sm:$0xff]  ;;  %v607_v35 = vld [vmem:[%s1684_s9 + $0x578] sm:$0xff] }
  0x82   : > { %897 = vmatpush.msrb.mxu2 %v538_v51  ;;  %919 = vmatpush.msrb.mxu3 %v555_v52  ;;  %v545_v32 = vld [vmem:[%s1684_s9 + $0x388] sm:$0xff]  ;;  %v512_v36 = vld [vmem:[%s1684_s9 + $0x280] sm:$0xff]  ;;  %v415_v39 = vld [vmem:[#allocation3 + $0xb8] sm:$0xff] }
  0x83   : > { %852 = vmatpush.msrb.mxu0 %v505_v53  ;;  %874 = vmatpush.msrb.mxu1 %v522_v54  ;;  %v544_v37 = vld [vmem:[%s1684_s9 + $0x380] sm:$0xff]  ;;  %v574_v40 = vld [vmem:[%s1684_s9 + $0x470] sm:$0xff]  ;;  %v591_v41 = vld [vmem:[%s1684_s9 + $0x4f8] sm:$0xff] }
  0x84   : > { %898 = vmatpush.msrb.mxu2 %v537_v55  ;;  %920 = vmatpush.msrb.mxu3 %v554_v56  ;;  %v412_v38 = vld [vmem:[#allocation3 + $0x120] sm:$0xff]  ;;  %v606_v42 = vld [vmem:[%s1684_s9 + $0x570] sm:$0xff]  ;;  %v623_v43 = vld [vmem:[%s1684_s9 + $0x5f8] sm:$0xff] }
  0x85   : > { %853 = vmatpush.msrb.mxu0 %v504_v57  ;;  %875 = vmatpush.msrb.mxu1 %v521_v58  ;;  %v413_v44 = vld [vmem:[#allocation3 + $0x90] sm:$0xff]  ;;  %v573_v45 = vld [vmem:[%s1684_s9 + $0x468] sm:$0xff]  ;;  %v572_v49 = vld [vmem:[%s1684_s9 + $0x460] sm:$0xff] }
  0x86   : > { %899 = vmatpush.msrb.mxu2 %v536_v59  ;;  %921 = vmatpush.msrb.mxu3 %v553_v60  ;;  %v590_v46 = vld [vmem:[%s1684_s9 + $0x4f0] sm:$0xff]  ;;  %v605_v47 = vld [vmem:[%s1684_s9 + $0x568] sm:$0xff]  ;;  %v604_v51 = vld [vmem:[%s1684_s9 + $0x560] sm:$0xff] }
  0x87   : > { %854 = vmatpush.msrb.mxu0 %v503_v61  ;;  %876 = vmatpush.msrb.mxu1 %v520_v62  ;;  %v622_v48 = vld [vmem:[%s1684_s9 + $0x5f0] sm:$0xff]  ;;  %v589_v50 = vld [vmem:[%s1684_s9 + $0x4e8] sm:$0xff]  ;;  %v398_v53 = vld [vmem:[#allocation3 + $0x80] sm:$0xff] }
  0x88   : > { %900 = vmatpush.msrb.mxu2 %v535_v63  ;;  %922 = vmatpush.msrb.mxu3 %v552_v0  ;;  %v621_v52 = vld [vmem:[%s1684_s9 + $0x5e8] sm:$0xff]  ;;  %v571_v54 = vld [vmem:[%s1684_s9 + $0x458] sm:$0xff]  ;;  %v588_v55 = vld [vmem:[%s1684_s9 + $0x4e0] sm:$0xff] }
  0x89   : > { %855 = vmatpush.msrb.mxu0 %v502_v1  ;;  %877 = vmatpush.msrb.mxu1 %v519_v2  ;;  %v603_v56 = vld [vmem:[%s1684_s9 + $0x558] sm:$0xff]  ;;  %v620_v57 = vld [vmem:[%s1684_s9 + $0x5e0] sm:$0xff]  ;;  %v396_v58 = vld [vmem:[#allocation3 + $0x30] sm:$0xff] }
  0x8a   : > { %901 = vmatpush.msrb.mxu2 %v534_v3  ;;  %923 = vmatpush.msrb.mxu3 %v551_v4  ;;  %v399_v59 = vld [vmem:[#allocation3 + $0xa0] sm:$0xff]  ;;  %v570_v60 = vld [vmem:[%s1684_s9 + $0x450] sm:$0xff]  ;;  %v587_v62 = vld [vmem:[%s1684_s9 + $0x4d8] sm:$0xff]  ;;  %v354_v3 = vstv %s1920_s14 }
  0x8b   : > { %856 = vmatpush.msrb.mxu0 %v501_v5  ;;  %878 = vmatpush.msrb.mxu1 %v518_v6  ;;  %v1931_v61 = vld [vmem:[#allocation2] sm:$0xff]  ;;  %v619_v1 = vld [vmem:[%s1684_s9 + $0x5d8] sm:$0xff]  ;;  %v569_v4 = vld [vmem:[%s1684_s9 + $0x448] sm:$0xff] }
  0x8c   : > { %902 = vmatpush.msrb.mxu2 %v533_v7  ;;  %924 = vmatpush.msrb.mxu3 %v550_v8  ;;  %v602_v63 = vld [vmem:[%s1684_s9 + $0x550] sm:$0xff]  ;;  %v352_v0 = vand.u32 2147483647, %v1931_v61  ;;  %v397_v2 = vld [vmem:[#allocation3 + $0x78] sm:$0xff]  ;;  %v601_v7 = vld [vmem:[%s1684_s9 + $0x548] sm:$0xff] }
  0x8d   : > { %857 = vmatpush.msrb.mxu0 %v500_v9  ;;  %879 = vmatpush.msrb.mxu1 %v517_v10  ;;  %v586_v5 = vld [vmem:[%s1684_s9 + $0x4d0] sm:$0xff]  ;;  %v568_v9 = vld [vmem:[%s1684_s9 + $0x440] sm:$0xff]  ;;  %v585_v10 = vld [vmem:[%s1684_s9 + $0x4c8] sm:$0xff] }
  0x8e   : > { %903 = vmatpush.msrb.mxu2 %v532_v11  ;;  %925 = vmatpush.msrb.mxu3 %v549_v12  ;;  %v355_v6 = vsub.f32 %v352_v0, %v354_v3  ;;  %v618_v8 = vld [vmem:[%s1684_s9 + $0x5d0] sm:$0xff]  ;;  %v600_v12 = vld [vmem:[%s1684_s9 + $0x540] sm:$0xff]  ;;  %v639_v0 = vld [vmem:[%s1684_s9 + $0x678] sm:$0xff] }
  0x8f   : > { %816 = vmatmul.f32.vlgmr.msra.gmra.mxu2 %v394_v13  ;;  %858 = vmatpush.msrb.mxu0 %v499_v14  ;;  %v617_v13 = vld [vmem:[%s1684_s9 + $0x5c8] sm:$0xff]  ;;  %v567_v14 = vld [vmem:[%s1684_s9 + $0x438] sm:$0xff] }
  0x90   : > { %880 = vmatpush.msrb.mxu1 %v516_v15  ;;  %904 = vmatpush.msrb.mxu2 %v531_v16  ;;  %v357_v11 = vsub.f32 0.0, %v355_v6  ;;  %v584_v15 = vld [vmem:[%s1684_s9 + $0x4c0] sm:$0xff]  ;;  %v638_v6 = vld [vmem:[%s1684_s9 + $0x670] sm:$0xff] }
  0x91   : > { %926 = vmatpush.msrb.mxu3 %v548_v17  ;;  %770 = vmatmul.f32.vlgmr.msra.gmra.mxu0 %v392_v18  ;;  %v599_v17 = vld [vmem:[%s1684_s9 + $0x538] sm:$0xff]  ;;  %v616_v18 = vld [vmem:[%s1684_s9 + $0x5c0] sm:$0xff] }
  0x92   : > { %839 = vmatmul.f32.vlgmr.msra.gmra.mxu3 %v395_v19  ;;  %859 = vmatpush.msrb.mxu0 %v498_v20  ;;  %v359_v16 = vmul.f32 1.442695, %v357_v11  ;;  %v566_v19 = vld [vmem:[%s1684_s9 + $0x430] sm:$0xff]  ;;  %v583_v20 = vld [vmem:[%s1684_s9 + $0x4b8] sm:$0xff] }
  0x93   : > { %881 = vmatpush.msrb.mxu1 %v515_v21  ;;  %905 = vmatpush.msrb.mxu2 %v530_v22  ;;  %v598_v21 = vld [vmem:[%s1684_s9 + $0x530] sm:$0xff]  ;;  %v615_v22 = vld [vmem:[%s1684_s9 + $0x5b8] sm:$0xff] }
  0x94   : > { %927 = vmatpush.msrb.mxu3 %v547_v23  ;;  %793 = vmatmul.f32.vlgmr.msra.gmra.mxu1 %v393_v24  ;;  %1433 = vpow2.f32 %v359_v16  ;;  %v565_v23 = vld [vmem:[%s1684_s9 + $0x428] sm:$0xff]  ;;  %v582_v24 = vld [vmem:[%s1684_s9 + $0x4b0] sm:$0xff]  ;;  %v668_v16 = vld [vmem:[%s1684_s9 + $0x760] sm:$0xff] }
  0x95   : > { %860 = vmatpush.msrb.mxu0 %v497_v25  ;;  %882 = vmatpush.msrb.mxu1 %v514_v26  ;;  %v1956_v25 = vld [vmem:[#allocation2 + $0x8] sm:$0xff]  ;;  %v597_v26 = vld [vmem:[%s1684_s9 + $0x528] sm:$0xff]  ;;  %v654_v11 = vld [vmem:[%s1684_s9 + $0x6f0] sm:$0xff] }
  0x96   : > { %906 = vmatpush.msrb.mxu2 %v529_v27  ;;  %928 = vmatpush.msrb.mxu3 %v546_v28  ;;  %v614_v27 = vld [vmem:[%s1684_s9 + $0x5b0] sm:$0xff]  ;;  %v353_v28 = vand.u32 2147483647, %v1956_v25 }
  0x97   : > { %861 = vmatpush.msrb.mxu0 %v496_v29  ;;  %883 = vmatpush.msrb.mxu1 %v513_v30  ;;  %v564_v29 = vld [vmem:[%s1684_s9 + $0x420] sm:$0xff]  ;;  %v581_v30 = vld [vmem:[%s1684_s9 + $0x4a8] sm:$0xff] }
  0x98   : > { %907 = vmatpush.msrb.mxu2 %v528_v31  ;;  %929 = vmatpush.msrb.mxu3 %v545_v32  ;;  %v596_v31 = vld [vmem:[%s1684_s9 + $0x520] sm:$0xff]  ;;  %v613_v32 = vld [vmem:[%s1684_s9 + $0x5a8] sm:$0xff] }
  0x99   : > { %819 = vmatmul.f32.gmra.mxu2 %v414_v33  ;;  %938 = vmatpush.msra.mxu0 %v575_v34  ;;  %v356_v33 = vsub.f32 %v353_v28, %v354_v3  ;;  %v608_v3 = vld [vmem:[%s1684_s9 + $0x580] sm:$0xff] }
  0x9a   : > { %984 = vmatpush.msra.mxu2 %v607_v35  ;;  %884 = vmatpush.msrb.mxu1 %v512_v36  ;;  %v1434_v34 = vpop.eup %1433  ;;  %v416_v35 = vld [vmem:[#allocation3 + $0xc8] sm:$0xff]  ;;  %v418_v36 = vld [vmem:[#allocation3 + $0x100] sm:$0xff] }
  0x9b   : > { %930 = vmatpush.msrb.mxu3 %v544_v37  ;;  %773 = vmatmul.f32.gmra.mxu0 %v412_v38  ;;  %v563_v37 = vld [vmem:[%s1684_s9 + $0x418] sm:$0xff]  ;;  %v580_v38 = vld [vmem:[%s1684_s9 + $0x4a0] sm:$0xff] }
  0x9c   : > { %842 = vmatmul.f32.gmra.mxu3 %v415_v39  ;;  %939 = vmatpush.msra.mxu0 %v574_v40  ;;  %v363_v39 = vadd.f32 1.0, %v1434_v34  ;;  %v358_v40 = vsub.f32 0.0, %v356_v33  ;;  %v423_v28 = vld [vmem:[#allocation3 + $0xc0] sm:$0xff]  ;;  %v633_v33 = vld [vmem:[%s1684_s9 + $0x648] sm:$0xff]  ;;  %v650_v34 = vld [vmem:[%s1684_s9 + $0x6d0] sm:$0xff] }
  0x9d   : > { %961 = vmatpush.msra.mxu1 %v591_v41  ;;  %985 = vmatpush.msra.mxu2 %v606_v42  ;;  %v595_v41 = vld [vmem:[%s1684_s9 + $0x518] sm:$0xff]  ;;  %v612_v42 = vld [vmem:[%s1684_s9 + $0x5a0] sm:$0xff] }
  0x9e   : > { %1007 = vmatpush.msra.mxu3 %v623_v43  ;;  %796 = vmatmul.f32.gmra.mxu1 %v413_v44  ;;  %v417_v43 = vld [vmem:[#allocation3 + $0xb0] sm:$0xff]  ;;  %v419_v44 = vld [vmem:[#allocation3 + $0xa8] sm:$0xff]  ;;  %1435 = vrcp.f32 %v363_v39  ;;  %v664_v39 = vld [vmem:[%s1684_s9 + $0x740] sm:$0xff] }
  0x9f   : > { %940 = vmatpush.msra.mxu0 %v573_v45  ;;  %962 = vmatpush.msra.mxu1 %v590_v46  ;;  %v361_v45 = vmul.f32 1.442695, %v358_v40  ;;  %v562_v46 = vld [vmem:[%s1684_s9 + $0x410] sm:$0xff]  ;;  %v681_v40 = vld [vmem:[%s1684_s9 + $0x7c8] sm:$0xff] }
  0xa0   : > { %986 = vmatpush.msra.mxu2 %v605_v47  ;;  %1008 = vmatpush.msra.mxu3 %v622_v48  ;;  %v579_v47 = vld [vmem:[%s1684_s9 + $0x498] sm:$0xff]  ;;  %v594_v48 = vld [vmem:[%s1684_s9 + $0x510] sm:$0xff] }
  0xa1   : > { %941 = vmatpush.msra.mxu0 %v572_v49  ;;  %963 = vmatpush.msra.mxu1 %v589_v50  ;;  %v611_v49 = vld [vmem:[%s1684_s9 + $0x598] sm:$0xff]  ;;  %1437 = vpow2.f32 %v361_v45  ;;  %v561_v50 = vld [vmem:[%s1684_s9 + $0x408] sm:$0xff]  ;;  %v680_v45 = vld [vmem:[%s1684_s9 + $0x7c0] sm:$0xff] }
  0xa2   : > { %987 = vmatpush.msra.mxu2 %v604_v51  ;;  %1009 = vmatpush.msra.mxu3 %v621_v52  ;;  %v578_v51 = vld [vmem:[%s1684_s9 + $0x490] sm:$0xff]  ;;  %v593_v52 = vld [vmem:[%s1684_s9 + $0x508] sm:$0xff] }
  0xa3   : > { %908 = vmatmul.f32.vlgmr.msrb.gmra.mxu2 %v398_v53  ;;  %942 = vmatpush.msra.mxu0 %v571_v54  ;;  %v610_v53 = vld [vmem:[%s1684_s9 + $0x590] sm:$0xff]  ;;  %v560_v54 = vld [vmem:[%s1684_s9 + $0x400] sm:$0xff] }
  0xa4   : > { %964 = vmatpush.msra.mxu1 %v588_v55  ;;  %988 = vmatpush.msra.mxu2 %v603_v56  ;;  %v577_v55 = vld [vmem:[%s1684_s9 + $0x488] sm:$0xff]  ;;  %v1436_v56 = vpop.eup %1435 }
  0xa5   : > { %1010 = vmatpush.msra.mxu3 %v620_v57  ;;  %862 = vmatmul.f32.vlgmr.msrb.gmra.mxu0 %v396_v58  ;;  %v592_v57 = vld [vmem:[%s1684_s9 + $0x500] sm:$0xff]  ;;  %v609_v58 = vld [vmem:[%s1684_s9 + $0x588] sm:$0xff] }
  0xa6   : > { %931 = vmatmul.f32.vlgmr.msrb.gmra.mxu3 %v399_v59  ;;  %943 = vmatpush.msra.mxu0 %v570_v60  ;;  %v400_v59 = vld [vmem:[#allocation3 + $0x88] sm:$0xff]  ;;  %v402_v60 = vld [vmem:[#allocation3 + $0x110] sm:$0xff] }
  0xa7   : > { %965 = vmatpush.msra.mxu1 %v587_v62  ;;  %989 = vmatpush.msra.mxu2 %v602_v63  ;;  %v1982_v62 = vmul.f32 %v1436_v56, %v1931_v61  ;;  %v1438_v63 = vpop.eup %1437  ;;  %v401_v61 = vld [vmem:[#allocation3 + $0x130] sm:$0xff]  ;;  %v660_v56 = vld [vmem:[%s1684_s9 + $0x720] sm:$0xff] }
  0xa8   : > { %1011 = vmatpush.msra.mxu3 %v619_v1  ;;  %885 = vmatmul.f32.vlgmr.msrb.gmra.mxu1 %v397_v2  ;;  %v671_v1 = vld [vmem:[%s1684_s9 + $0x778] sm:$0xff]  ;;  %v576_v2 = vld [vmem:[%s1684_s9 + $0x480] sm:$0xff] }
  0xa9   : > { %944 = vmatpush.msra.mxu0 %v569_v4  ;;  %966 = vmatpush.msra.mxu1 %v586_v5  ;;  %369 = vst [vmem:[#allocation4 + $0x2] sm:$0xff] %v1982_v62  ;;  %v364_v4 = vadd.f32 1.0, %v1438_v63  ;;  %v403_v5 = vld [vmem:[#allocation3 + $0x10] sm:$0xff]  ;;  %v676_v63 = vld [vmem:[%s1684_s9 + $0x7a0] sm:$0xff] }
  0xaa   : > { %990 = vmatpush.msra.mxu2 %v601_v7  ;;  %1012 = vmatpush.msra.mxu3 %v618_v8  ;;  %v655_v7 = vld [vmem:[%s1684_s9 + $0x6f8] sm:$0xff]  ;;  %v670_v8 = vld [vmem:[%s1684_s9 + $0x770] sm:$0xff] }
  0xab   : > { %945 = vmatpush.msra.mxu0 %v568_v9  ;;  %967 = vmatpush.msra.mxu1 %v585_v10  ;;  %1439 = vrcp.f32 %v364_v4  ;;  %v687_v9 = vld [vmem:[%s1684_s9 + $0x7f8] sm:$0xff]  ;;  %v637_v10 = vld [vmem:[%s1684_s9 + $0x668] sm:$0xff] }
  0xac   : > { %991 = vmatpush.msra.mxu2 %v600_v12  ;;  %1013 = vmatpush.msra.mxu3 %v617_v13  ;;  %v669_v12 = vld [vmem:[%s1684_s9 + $0x768] sm:$0xff]  ;;  %v686_v13 = vld [vmem:[%s1684_s9 + $0x7f0] sm:$0xff] }
  0xad   : > { %946 = vmatpush.msra.mxu0 %v567_v14  ;;  %968 = vmatpush.msra.mxu1 %v584_v15  ;;  %v636_v14 = vld [vmem:[%s1684_s9 + $0x660] sm:$0xff]  ;;  %v653_v15 = vld [vmem:[%s1684_s9 + $0x6e8] sm:$0xff] }
  0xae   : > { %992 = vmatpush.msra.mxu2 %v599_v17  ;;  %1014 = vmatpush.msra.mxu3 %v616_v18  ;;  %v685_v17 = vld [vmem:[%s1684_s9 + $0x7e8] sm:$0xff] }
  0xaf   : > { %947 = vmatpush.msra.mxu0 %v566_v19  ;;  %969 = vmatpush.msra.mxu1 %v583_v20  ;;  %v422_v20 = vld [vmem:[#allocation3 + $0xf8] sm:$0xff]  ;;  %v625_v4 = vld [vmem:[%s1684_s9 + $0x608] sm:$0xff] }
  0xb0   : > { %993 = vmatpush.msra.mxu2 %v598_v21  ;;  %1015 = vmatpush.msra.mxu3 %v615_v22  ;;  %v2001_v18 = vld [vmem:[#allocation4] sm:$0xff]  ;;  %v635_v21 = vld [vmem:[%s1684_s9 + $0x658] sm:$0xff] }
  0xb1   : > { %948 = vmatpush.msra.mxu0 %v565_v23  ;;  %970 = vmatpush.msra.mxu1 %v582_v24  ;;  %v1440_v19 = vpop.eup %1439  ;;  %v652_v22 = vld [vmem:[%s1684_s9 + $0x6e0] sm:$0xff]  ;;  %v667_v23 = vld [vmem:[%s1684_s9 + $0x758] sm:$0xff] }
  0xb2   : > { %994 = vmatpush.msra.mxu2 %v597_v26  ;;  %1016 = vmatpush.msra.mxu3 %v614_v27  ;;  %v2007_v24 = vmul.f32 %v1440_v19, %v1956_v25  ;;  %v684_v26 = vld [vmem:[%s1684_s9 + $0x7e0] sm:$0xff]  ;;  %v666_v25 = vld [vmem:[%s1684_s9 + $0x750] sm:$0xff] }
  0xb3   : > { %949 = vmatpush.msra.mxu0 %v564_v29  ;;  %971 = vmatpush.msra.mxu1 %v581_v30  ;;  %v420_v27 = vld [vmem:[#allocation3 + $0xe0] sm:$0xff]  ;;  %v634_v29 = vld [vmem:[%s1684_s9 + $0x650] sm:$0xff]  ;;  %v651_v30 = vld [vmem:[%s1684_s9 + $0x6d8] sm:$0xff] }
  0xb4   : > { %995 = vmatpush.msra.mxu2 %v596_v31  ;;  %1017 = vmatpush.msra.mxu3 %v613_v32  ;;  %371 = vst [vmem:[#allocation4 + $0x12] sm:$0xff] %v2007_v24  ;;  %v683_v31 = vld [vmem:[%s1684_s9 + $0x7d8] sm:$0xff]  ;;  %v702_v19 = vld [vmem:[%s1684_s9 + $0x870] sm:$0xff] }
  0xb5   : > { %865 = vmatmul.f32.gmra.mxu0 %v416_v35  ;;  %911 = vmatmul.f32.gmra.mxu2 %v418_v36  ;;  %v421_v32 = vld [vmem:[#allocation3 + $0x98] sm:$0xff]  ;;  %v665_v35 = vld [vmem:[%s1684_s9 + $0x748] sm:$0xff]  ;;  %v682_v36 = vld [vmem:[%s1684_s9 + $0x7d0] sm:$0xff] }
  0xb6   : > { %950 = vmatpush.msra.mxu0 %v563_v37  ;;  %972 = vmatpush.msra.mxu1 %v580_v38  ;;  %v632_v37 = vld [vmem:[%s1684_s9 + $0x640] sm:$0xff]  ;;  %v649_v38 = vld [vmem:[%s1684_s9 + $0x6c8] sm:$0xff] }
  0xb7   : > { %996 = vmatpush.msra.mxu2 %v595_v41  ;;  %1018 = vmatpush.msra.mxu3 %v612_v42  ;;  %v631_v41 = vld [vmem:[%s1684_s9 + $0x638] sm:$0xff]  ;;  %v648_v42 = vld [vmem:[%s1684_s9 + $0x6c0] sm:$0xff] }
  0xb8   : > { %888 = vmatmul.f32.gmra.mxu1 %v417_v43  ;;  %934 = vmatmul.f32.gmra.mxu3 %v419_v44  ;;  %v663_v44 = vld [vmem:[%s1684_s9 + $0x738] sm:$0xff] }
  0xb9   : > { %951 = vmatpush.msra.mxu0 %v562_v46  ;;  %973 = vmatpush.msra.mxu1 %v579_v47  ;;  %v630_v46 = vld [vmem:[%s1684_s9 + $0x630] sm:$0xff]  ;;  %v647_v47 = vld [vmem:[%s1684_s9 + $0x6b8] sm:$0xff] }
  0xba   : > { %997 = vmatpush.msra.mxu2 %v594_v48  ;;  %1019 = vmatpush.msra.mxu3 %v611_v49  ;;  %v662_v48 = vld [vmem:[%s1684_s9 + $0x730] sm:$0xff]  ;;  %v679_v49 = vld [vmem:[%s1684_s9 + $0x7b8] sm:$0xff] }
  0xbb   : > { %952 = vmatpush.msra.mxu0 %v561_v50  ;;  %974 = vmatpush.msra.mxu1 %v578_v51  ;;  %v2025_v43 = vld [vmem:[#allocation4 + $0x10] sm:$0xff]  ;;  %v629_v50 = vld [vmem:[%s1684_s9 + $0x628] sm:$0xff] }
  0xbc   : > { %998 = vmatpush.msra.mxu2 %v593_v52  ;;  %1020 = vmatpush.msra.mxu3 %v610_v53  ;;  %v646_v51 = vld [vmem:[%s1684_s9 + $0x6b0] sm:$0xff]  ;;  %v661_v52 = vld [vmem:[%s1684_s9 + $0x728] sm:$0xff] }
  0xbd   : > { %953 = vmatpush.msra.mxu0 %v560_v54  ;;  %975 = vmatpush.msra.mxu1 %v577_v55  ;;  %v678_v53 = vld [vmem:[%s1684_s9 + $0x7b0] sm:$0xff]  ;;  %v628_v54 = vld [vmem:[%s1684_s9 + $0x620] sm:$0xff]  ;;  %v645_v55 = vld [vmem:[%s1684_s9 + $0x6a8] sm:$0xff] }
  0xbe   : > { %999 = vmatpush.msra.mxu2 %v592_v57  ;;  %1021 = vmatpush.msra.mxu3 %v609_v58  ;;  %v677_v57 = vld [vmem:[%s1684_s9 + $0x7a8] sm:$0xff]  ;;  %v627_v58 = vld [vmem:[%s1684_s9 + $0x618] sm:$0xff] }
  0xbf   : > { %954 = vmatmul.f32.vlgmr.msra.gmra.mxu0 %v400_v59  ;;  %1000 = vmatmul.f32.vlgmr.msra.gmra.mxu2 %v402_v60  ;;  %v644_v59 = vld [vmem:[%s1684_s9 + $0x6a0] sm:$0xff]  ;;  %v659_v60 = vld [vmem:[%s1684_s9 + $0x718] sm:$0xff] }
  0xc0   : > { %1030 = vmatpush.msrb.mxu0 %v639_v0  ;;  %1076 = vmatpush.msrb.mxu2 %v671_v1  ;;  %v626_v0 = vld [vmem:[%s1684_s9 + $0x610] sm:$0xff]  ;;  %v643_v1 = vld [vmem:[%s1684_s9 + $0x698] sm:$0xff] }
  0xc1   : > { %976 = vmatpush.msra.mxu1 %v576_v2  ;;  %1022 = vmatpush.msra.mxu3 %v608_v3  ;;  %v658_v2 = vld [vmem:[%s1684_s9 + $0x710] sm:$0xff]  ;;  %v675_v3 = vld [vmem:[%s1684_s9 + $0x798] sm:$0xff] }
  0xc2   : > { %977 = vmatmul.f32.vlgmr.msra.gmra.mxu1 %v401_v61  ;;  %1023 = vmatmul.f32.vlgmr.msra.gmra.mxu3 %v403_v5  ;;  %v642_v61 = vld [vmem:[%s1684_s9 + $0x690] sm:$0xff]  ;;  %v657_v5 = vld [vmem:[%s1684_s9 + $0x708] sm:$0xff] }
  0xc3   : > { %1031 = vmatpush.msrb.mxu0 %v638_v6  ;;  %1053 = vmatpush.msrb.mxu1 %v655_v7  ;;  %v674_v6 = vld [vmem:[%s1684_s9 + $0x790] sm:$0xff]  ;;  %v624_v7 = vld [vmem:[%s1684_s9 + $0x600] sm:$0xff] }
  0xc4   : > { %1077 = vmatpush.msrb.mxu2 %v670_v8  ;;  %1099 = vmatpush.msrb.mxu3 %v687_v9  ;;  %v641_v8 = vld [vmem:[%s1684_s9 + $0x688] sm:$0xff]  ;;  %v656_v9 = vld [vmem:[%s1684_s9 + $0x700] sm:$0xff] }
  0xc5   : > { %1032 = vmatpush.msrb.mxu0 %v637_v10  ;;  %1054 = vmatpush.msrb.mxu1 %v654_v11  ;;  %v673_v10 = vld [vmem:[%s1684_s9 + $0x788] sm:$0xff] }
  0xc6   : > { %1078 = vmatpush.msrb.mxu2 %v669_v12  ;;  %1100 = vmatpush.msrb.mxu3 %v686_v13  ;;  %v404_v11 = vld [vmem:[#allocation3 + $0xe8] sm:$0xff]  ;;  %v406_v12 = vld [vmem:[#allocation3 + $0x18] sm:$0xff] }
  0xc7   : > { %1033 = vmatpush.msrb.mxu0 %v636_v14  ;;  %1055 = vmatpush.msrb.mxu1 %v653_v15  ;;  %v703_v13 = vld [vmem:[%s1684_s9 + $0x878] sm:$0xff]  ;;  %v640_v15 = vld [vmem:[%s1684_s9 + $0x680] sm:$0xff] }
  0xc8   : > { %1079 = vmatpush.msrb.mxu2 %v668_v16  ;;  %1101 = vmatpush.msrb.mxu3 %v685_v17  ;;  %v735_v14 = vld [vmem:[%s1684_s9 + $0x978] sm:$0xff]  ;;  %v672_v16 = vld [vmem:[%s1684_s9 + $0x780] sm:$0xff]  ;;  %v405_v17 = vld [vmem:[#allocation3 + $0x68] sm:$0xff] }
  0xc9   : > { %1003 = vmatmul.f32.gmra.mxu2 %v422_v20  ;;  %1034 = vmatpush.msrb.mxu0 %v635_v21  ;;  %v719_v20 = vld [vmem:[%s1684_s9 + $0x8f8] sm:$0xff]  ;;  %v734_v21 = vld [vmem:[%s1684_s9 + $0x970] sm:$0xff] }
  0xca   : > { %1056 = vmatpush.msrb.mxu1 %v652_v22  ;;  %1080 = vmatpush.msrb.mxu2 %v667_v23  ;;  %v751_v22 = vld [vmem:[%s1684_s9 + $0x9f8] sm:$0xff]  ;;  %v701_v23 = vld [vmem:[%s1684_s9 + $0x868] sm:$0xff] }
  0xcb   : > { %1102 = vmatpush.msrb.mxu3 %v684_v26  ;;  %957 = vmatmul.f32.gmra.mxu0 %v420_v27  ;;  %v718_v26 = vld [vmem:[%s1684_s9 + $0x8f0] sm:$0xff]  ;;  %v2068_v27 = vld [vmem:[#allocation4 + $0x1] sm:$0xff] }
  0xcc   : > { %1026 = vmatmul.f32.gmra.mxu3 %v423_v28  ;;  %1035 = vmatpush.msrb.mxu0 %v634_v29  ;;  %v733_v28 = vld [vmem:[%s1684_s9 + $0x968] sm:$0xff]  ;;  %v750_v29 = vld [vmem:[%s1684_s9 + $0x9f0] sm:$0xff] }
  0xcd   : > { %1057 = vmatpush.msrb.mxu1 %v651_v30  ;;  %1081 = vmatpush.msrb.mxu2 %v666_v25  ;;  %v2072_v30 = vld [vmem:[#allocation4 + $0x3] sm:$0xff] }
  0xce   : > { %1103 = vmatpush.msrb.mxu3 %v683_v31  ;;  %980 = vmatmul.f32.gmra.mxu1 %v421_v32  ;;  %v700_v25 = vld [vmem:[%s1684_s9 + $0x860] sm:$0xff]  ;;  %v717_v31 = vld [vmem:[%s1684_s9 + $0x8e8] sm:$0xff] }
  0xcf   : > { %1036 = vmatpush.msrb.mxu0 %v633_v33  ;;  %1058 = vmatpush.msrb.mxu1 %v650_v34  ;;  %v2076_v32 = vld [vmem:[#allocation4 + $0x4] sm:$0xff]  ;;  %v2080_v34 = vld [vmem:[#allocation4 + $0x11] sm:$0xff] }
  0xd0   : > { %1082 = vmatpush.msrb.mxu2 %v665_v35  ;;  %1104 = vmatpush.msrb.mxu3 %v682_v36  ;;  %v749_v33 = vld [vmem:[%s1684_s9 + $0x9e8] sm:$0xff]  ;;  %v424_v35 = vld [vmem:[#allocation3 + $0x60] sm:$0xff] }
  0xd1   : > { %1037 = vmatpush.msrb.mxu0 %v632_v37  ;;  %1059 = vmatpush.msrb.mxu1 %v649_v38  ;;  %v426_v36 = vld [vmem:[#allocation3 + $0x48] sm:$0xff]  ;;  %v699_v37 = vld [vmem:[%s1684_s9 + $0x858] sm:$0xff]  ;;  %v716_v38 = vld [vmem:[%s1684_s9 + $0x8e0] sm:$0xff] }
  0xd2   : > { %1083 = vmatpush.msrb.mxu2 %v664_v39  ;;  %1105 = vmatpush.msrb.mxu3 %v681_v40  ;;  %v731_v39 = vld [vmem:[%s1684_s9 + $0x958] sm:$0xff]  ;;  %v748_v40 = vld [vmem:[%s1684_s9 + $0x9e0] sm:$0xff] }
  0xd3   : > { %1038 = vmatpush.msrb.mxu0 %v631_v41  ;;  %1060 = vmatpush.msrb.mxu1 %v648_v42  ;;  %v425_v41 = vld [vmem:[#allocation3 + $0x128] sm:$0xff]  ;;  %v698_v42 = vld [vmem:[%s1684_s9 + $0x850] sm:$0xff] }
  0xd4   : > { %1084 = vmatpush.msrb.mxu2 %v663_v44  ;;  %1106 = vmatpush.msrb.mxu3 %v680_v45  ;;  %v715_v44 = vld [vmem:[%s1684_s9 + $0x8d8] sm:$0xff] }
  0xd5   : > { %1039 = vmatpush.msrb.mxu0 %v630_v46  ;;  %1061 = vmatpush.msrb.mxu1 %v647_v47  ;;  %v2088_v45 = vld [vmem:[#allocation4 + $0x13] sm:$0xff] }
  0xd6   : > { %1085 = vmatpush.msrb.mxu2 %v662_v48  ;;  %1107 = vmatpush.msrb.mxu3 %v679_v49  ;;  %v730_v46 = vld [vmem:[%s1684_s9 + $0x950] sm:$0xff]  ;;  %v747_v47 = vld [vmem:[%s1684_s9 + $0x9d8] sm:$0xff]  ;;  %v697_v48 = vld [vmem:[%s1684_s9 + $0x848] sm:$0xff] }
  0xd7   : > { %1040 = vmatpush.msrb.mxu0 %v629_v50  ;;  %1062 = vmatpush.msrb.mxu1 %v646_v51  ;;  %v714_v49 = vld [vmem:[%s1684_s9 + $0x8d0] sm:$0xff]  ;;  %v729_v51 = vld [vmem:[%s1684_s9 + $0x948] sm:$0xff] }
  0xd8   : > { %1086 = vmatpush.msrb.mxu2 %v661_v52  ;;  %1108 = vmatpush.msrb.mxu3 %v678_v53  ;;  %v2095_v50 = vld [vmem:[#allocation4 + $0x14] sm:$0xff]  ;;  %v696_v53 = vld [vmem:[%s1684_s9 + $0x840] sm:$0xff] }
  0xd9   : > { %1041 = vmatpush.msrb.mxu0 %v628_v54  ;;  %1063 = vmatpush.msrb.mxu1 %v645_v55  ;;  %v746_v52 = vld [vmem:[%s1684_s9 + $0x9d0] sm:$0xff]  ;;  %v713_v54 = vld [vmem:[%s1684_s9 + $0x8c8] sm:$0xff] }
  0xda   : > { %1087 = vmatpush.msrb.mxu2 %v660_v56  ;;  %1109 = vmatpush.msrb.mxu3 %v677_v57  ;;  %v745_v55 = vld [vmem:[%s1684_s9 + $0x9c8] sm:$0xff]  ;;  %v695_v56 = vld [vmem:[%s1684_s9 + $0x838] sm:$0xff]  ;;  %v712_v57 = vld [vmem:[%s1684_s9 + $0x8c0] sm:$0xff] }
  0xdb   : > { %1042 = vmatpush.msrb.mxu0 %v627_v58  ;;  %1064 = vmatpush.msrb.mxu1 %v644_v59  ;;  %v727_v58 = vld [vmem:[%s1684_s9 + $0x938] sm:$0xff]  ;;  %v744_v59 = vld [vmem:[%s1684_s9 + $0x9c0] sm:$0xff] }
  0xdc   : > { %1088 = vmatpush.msrb.mxu2 %v659_v60  ;;  %1110 = vmatpush.msrb.mxu3 %v676_v63  ;;  %v694_v60 = vld [vmem:[%s1684_s9 + $0x830] sm:$0xff]  ;;  %v711_v63 = vld [vmem:[%s1684_s9 + $0x8b8] sm:$0xff] }
  0xdd   : > { %1043 = vmatpush.msrb.mxu0 %v626_v0  ;;  %1065 = vmatpush.msrb.mxu1 %v643_v1  ;;  %v726_v0 = vld [vmem:[%s1684_s9 + $0x930] sm:$0xff]  ;;  %v743_v1 = vld [vmem:[%s1684_s9 + $0x9b8] sm:$0xff] }
  0xde   : > { %1089 = vmatpush.msrb.mxu2 %v658_v2  ;;  %1111 = vmatpush.msrb.mxu3 %v675_v3  ;;  %v693_v2 = vld [vmem:[%s1684_s9 + $0x828] sm:$0xff]  ;;  %v710_v3 = vld [vmem:[%s1684_s9 + $0x8b0] sm:$0xff] }
  0xdf   : > { %1044 = vmatpush.msrb.mxu0 %v625_v4  ;;  %1066 = vmatpush.msrb.mxu1 %v642_v61  ;;  %v725_v4 = vld [vmem:[%s1684_s9 + $0x928] sm:$0xff]  ;;  %v742_v61 = vld [vmem:[%s1684_s9 + $0x9b0] sm:$0xff] }
  0xe0   : > { %1090 = vmatpush.msrb.mxu2 %v657_v5  ;;  %1112 = vmatpush.msrb.mxu3 %v674_v6  ;;  %v692_v5 = vld [vmem:[%s1684_s9 + $0x820] sm:$0xff]  ;;  %v709_v6 = vld [vmem:[%s1684_s9 + $0x8a8] sm:$0xff] }
  0xe1   : > { %1045 = vmatpush.msrb.mxu0 %v624_v7  ;;  %1067 = vmatpush.msrb.mxu1 %v641_v8  ;;  %v724_v7 = vld [vmem:[%s1684_s9 + $0x920] sm:$0xff]  ;;  %v741_v8 = vld [vmem:[%s1684_s9 + $0x9a8] sm:$0xff] }
  0xe2   : > { %1091 = vmatpush.msrb.mxu2 %v656_v9  ;;  %1113 = vmatpush.msrb.mxu3 %v673_v10  ;;  %v691_v9 = vld [vmem:[%s1684_s9 + $0x818] sm:$0xff]  ;;  %v708_v10 = vld [vmem:[%s1684_s9 + $0x8a0] sm:$0xff] }
  0xe3   : > { %1046 = vmatmul.f32.vlgmr.msrb.gmra.mxu0 %v404_v11  ;;  %1092 = vmatmul.f32.vlgmr.msrb.gmra.mxu2 %v406_v12  ;;  %v723_v11 = vld [vmem:[%s1684_s9 + $0x918] sm:$0xff]  ;;  %v740_v12 = vld [vmem:[%s1684_s9 + $0x9a0] sm:$0xff] }
  0xe4   : > { %1122 = vmatpush.msra.mxu0 %v703_v13  ;;  %1168 = vmatpush.msra.mxu2 %v735_v14  ;;  %v690_v13 = vld [vmem:[%s1684_s9 + $0x810] sm:$0xff]  ;;  %v707_v14 = vld [vmem:[%s1684_s9 + $0x898] sm:$0xff] }
  0xe5   : > { %1068 = vmatpush.msrb.mxu1 %v640_v15  ;;  %1114 = vmatpush.msrb.mxu3 %v672_v16  ;;  %v722_v15 = vld [vmem:[%s1684_s9 + $0x910] sm:$0xff]  ;;  %v739_v16 = vld [vmem:[%s1684_s9 + $0x998] sm:$0xff] }
  0xe6   : > { %1069 = vmatmul.f32.vlgmr.msrb.gmra.mxu1 %v405_v17  ;;  %1115 = vmatmul.f32.vlgmr.msrb.gmra.mxu3 %v2001_v18  ;;  %v732_v18 = vld [vmem:[%s1684_s9 + $0x960] sm:$0xff]  ;;  %v689_v17 = vld [vmem:[%s1684_s9 + $0x808] sm:$0xff] }
  0xe7   : > { %1123 = vmatpush.msra.mxu0 %v702_v19  ;;  %1145 = vmatpush.msra.mxu1 %v719_v20  ;;  %v706_v19 = vld [vmem:[%s1684_s9 + $0x890] sm:$0xff]  ;;  %v721_v20 = vld [vmem:[%s1684_s9 + $0x908] sm:$0xff] }
  0xe8   : > { %1169 = vmatpush.msra.mxu2 %v734_v21  ;;  %1191 = vmatpush.msra.mxu3 %v751_v22  ;;  %v738_v21 = vld [vmem:[%s1684_s9 + $0x990] sm:$0xff]  ;;  %v688_v22 = vld [vmem:[%s1684_s9 + $0x800] sm:$0xff] }
  0xe9   : > { %1124 = vmatpush.msra.mxu0 %v701_v23  ;;  %1146 = vmatpush.msra.mxu1 %v718_v26  ;;  %v705_v23 = vld [vmem:[%s1684_s9 + $0x888] sm:$0xff]  ;;  %v720_v26 = vld [vmem:[%s1684_s9 + $0x900] sm:$0xff] }
  0xea   : > { %1170 = vmatpush.msra.mxu2 %v733_v28  ;;  %1192 = vmatpush.msra.mxu3 %v750_v29  ;;  %v737_v28 = vld [vmem:[%s1684_s9 + $0x988] sm:$0xff]  ;;  %v704_v29 = vld [vmem:[%s1684_s9 + $0x880] sm:$0xff] }
  0xeb   : > { %1125 = vmatpush.msra.mxu0 %v700_v25  ;;  %1147 = vmatpush.msra.mxu1 %v717_v31  ;;  %v736_v25 = vld [vmem:[%s1684_s9 + $0x980] sm:$0xff] }
  0xec   : > { %1171 = vmatpush.msra.mxu2 %v732_v18  ;;  %1193 = vmatpush.msra.mxu3 %v749_v33 }
  0xed   : > { %1049 = vmatmul.f32.gmra.mxu0 %v424_v35  ;;  %1095 = vmatmul.f32.gmra.mxu2 %v426_v36 }
  0xee   : > { %1126 = vmatpush.msra.mxu0 %v699_v37  ;;  %1148 = vmatpush.msra.mxu1 %v716_v38 }
  0xef   : > { %1172 = vmatpush.msra.mxu2 %v731_v39  ;;  %1194 = vmatpush.msra.mxu3 %v748_v40 }
  0xf0   : > { %1072 = vmatmul.f32.gmra.mxu1 %v425_v41  ;;  %1118 = vmatmul.f32.gmra.mxu3 %v2025_v43  ;;  %v728_v43 = vld [vmem:[%s1684_s9 + $0x940] sm:$0xff]  ;;  %s752_s9 = sld [smem:[#allocation8 + %s1551_s18]] }
  0xf1   : > { %1127 = vmatpush.msra.mxu0 %v698_v42  ;;  %1149 = vmatpush.msra.mxu1 %v715_v44 }
  0xf2   : > { %1173 = vmatpush.msra.mxu2 %v730_v46  ;;  %1195 = vmatpush.msra.mxu3 %v747_v47 }
  0xf3   : > { %1128 = vmatpush.msra.mxu0 %v697_v48  ;;  %1150 = vmatpush.msra.mxu1 %v714_v49 }
  0xf4   : > { %1174 = vmatpush.msra.mxu2 %v729_v51  ;;  %1196 = vmatpush.msra.mxu3 %v746_v52 }
  0xf5   : > { %1129 = vmatpush.msra.mxu0 %v696_v53  ;;  %1151 = vmatpush.msra.mxu1 %v713_v54 }
  0xf6   : > { %1175 = vmatpush.msra.mxu2 %v728_v43  ;;  %1197 = vmatpush.msra.mxu3 %v745_v55  ;;  %v753_v37 = vstv %s752_s9 }
  0xf7   : > { %1130 = vmatpush.msra.mxu0 %v695_v56  ;;  %1152 = vmatpush.msra.mxu1 %v712_v57 }
  0xf8   : > { %1176 = vmatpush.msra.mxu2 %v727_v58  ;;  %1198 = vmatpush.msra.mxu3 %v744_v59 }
  0xf9   : > { %1131 = vmatpush.msra.mxu0 %v694_v60  ;;  %1153 = vmatpush.msra.mxu1 %v711_v63 }
  0xfa   : > { %1177 = vmatpush.msra.mxu2 %v726_v0  ;;  %1199 = vmatpush.msra.mxu3 %v743_v1 }
  0xfb   : > { %1132 = vmatpush.msra.mxu0 %v693_v2  ;;  %1154 = vmatpush.msra.mxu1 %v710_v3 }
  0xfc   : > { %1178 = vmatpush.msra.mxu2 %v725_v4  ;;  %1200 = vmatpush.msra.mxu3 %v742_v61 }
  0xfd   : > { %1133 = vmatpush.msra.mxu0 %v692_v5  ;;  %1155 = vmatpush.msra.mxu1 %v709_v6 }
  0xfe   : > { %1179 = vmatpush.msra.mxu2 %v724_v7  ;;  %1201 = vmatpush.msra.mxu3 %v741_v8 }
  0xff   : > { %1134 = vmatpush.msra.mxu0 %v691_v9  ;;  %1156 = vmatpush.msra.mxu1 %v708_v10 }
 0x100   : > { %1180 = vmatpush.msra.mxu2 %v723_v11  ;;  %1202 = vmatpush.msra.mxu3 %v740_v12 }
 0x101   : > { %1135 = vmatpush.msra.mxu0 %v690_v13  ;;  %1157 = vmatpush.msra.mxu1 %v707_v14 }
 0x102   : > { %1181 = vmatpush.msra.mxu2 %v722_v15  ;;  %1203 = vmatpush.msra.mxu3 %v739_v16 }
 0x103   : > { %1136 = vmatpush.msra.mxu0 %v689_v17  ;;  %1158 = vmatpush.msra.mxu1 %v706_v19 }
 0x104   : > { %1182 = vmatpush.msra.mxu2 %v721_v20  ;;  %1204 = vmatpush.msra.mxu3 %v738_v21 }
 0x105   : > { %1137 = vmatpush.msra.mxu0 %v688_v22  ;;  %1159 = vmatpush.msra.mxu1 %v705_v23 }
 0x106   : > { %1183 = vmatpush.msra.mxu2 %v720_v26  ;;  %1205 = vmatpush.msra.mxu3 %v737_v28 }
 0x107   : > { %1138 = vmatmul.f32.vlgmr.msra.gmra.mxu0 %v2068_v27  ;;  %1184 = vmatmul.f32.vlgmr.msra.gmra.mxu2 %v2072_v30 }
 0x108   : > { %1160 = vmatpush.msra.mxu1 %v704_v29  ;;  %1206 = vmatpush.msra.mxu3 %v736_v25 }
 0x109   : > { %1161 = vmatmul.f32.vlgmr.msra.gmra.mxu1 %v1982_v62  ;;  %1207 = vmatmul.f32.vlgmr.msra.gmra.mxu3 %v2076_v32 }
 0x10e   : > { %v771_v31 = vpop.f32.mrf.mxu0 }
 0x10f   : > { %1141 = vmatmul.f32.gmra.mxu0 %v2080_v34  ;;  %1187 = vmatmul.f32.gmra.mxu2 %v2088_v45  ;;  %v772_v38 = vadd.f32 %v771_v31, %v753_v37 }
 0x111   : > { %1164 = vmatmul.f32.gmra.mxu1 %v2007_v24  ;;  %1210 = vmatmul.f32.gmra.mxu3 %v2095_v50  ;;  %v794_v18 = vpop.f32.mrf.mxu1 }
 0x112   : > { %v817_v33 = vpop.f32.mrf.mxu2  ;;  %v795_v34 = vadd.f32 %v794_v18, %v772_v38 }
 0x114   : > { %v818_v24 = vadd.f32 %v817_v33, %v795_v34 }
 0x115   : > { %v840_v27 = vpop.f32.mrf.mxu3 }
 0x116   : > { %v841_v47 = vadd.f32 %v840_v27, %v818_v24 }
 0x118   : > { %v774_v30 = vpop.f32.mrf.mxu0 }
 0x119   : > { %v775_v40 = vadd.f32 %v774_v30, %v753_v37 }
 0x11b   : > { %v797_v35 = vpop.f32.mrf.mxu1 }
 0x11c   : > { %v820_v36 = vpop.f32.mrf.mxu2  ;;  %v798_v44 = vadd.f32 %v797_v35, %v775_v40 }
 0x11e   : > { %v821_v48 = vadd.f32 %v820_v36, %v798_v44 }
 0x11f   : > { %v843_v62 = vpop.f32.mrf.mxu3 }
 0x120   : > { %v844_v51 = vadd.f32 %v843_v62, %v821_v48 }
 0x122   : > { %v863_v32 = vpop.f32.mrf.mxu0 }
 0x123   : > { %v864_v52 = vadd.f32 %v863_v32, %v841_v47 }
 0x125   : > { %v886_v39 = vpop.f32.mrf.mxu1 }
 0x126   : > { %v909_v41 = vpop.f32.mrf.mxu2  ;;  %v887_v54 = vadd.f32 %v886_v39, %v864_v52 }
 0x128   : > { %v910_v57 = vadd.f32 %v909_v41, %v887_v54 }
 0x129   : > { %v932_v42 = vpop.f32.mrf.mxu3 }
 0x12a   : > { %v933_v63 = vadd.f32 %v932_v42, %v910_v57 }
 0x132   : > { %v866_v45 = vpop.f32.mrf.mxu0 }
 0x133   : > { %v867_v43 = vadd.f32 %v866_v45, %v844_v51 }
 0x135   : > { %v889_v46 = vpop.f32.mrf.mxu1 }
 0x136   : > { %v890_v58 = vadd.f32 %v889_v46, %v867_v43 }
 0x138   : > { %v912_v49 = vpop.f32.mrf.mxu2 }
 0x139   : > { %v913_v0 = vadd.f32 %v912_v49, %v890_v58 }
 0x13b   : > { %v935_v50 = vpop.f32.mrf.mxu3 }
 0x13c   : > { %v955_v53 = vpop.f32.mrf.mxu0  ;;  %v936_v3 = vadd.f32 %v935_v50, %v913_v0 }
 0x13d   : > { %v956_v2 = vadd.f32 %v955_v53, %v933_v63 }
 0x13f   : > { %v978_v55 = vpop.f32.mrf.mxu1 }
 0x140   : > { %v979_v61 = vadd.f32 %v978_v55, %v956_v2 }
 0x142   : > { %v1001_v56 = vpop.f32.mrf.mxu2 }
 0x143   : > { %v1002_v7 = vadd.f32 %v1001_v56, %v979_v61 }
 0x145   : > { %v1024_v59 = vpop.f32.mrf.mxu3 }
 0x146   : > { %v1025_v10 = vadd.f32 %v1024_v59, %v1002_v7 }
 0x148   : > { %v958_v60 = vpop.f32.mrf.mxu0 }
 0x149   : > { %v959_v8 = vadd.f32 %v958_v60, %v936_v3 }
 0x14b   : > { %v981_v1 = vpop.f32.mrf.mxu1 }
 0x14c   : > { %v1004_v4 = vpop.f32.mrf.mxu2  ;;  %v982_v11 = vadd.f32 %v981_v1, %v959_v8 }
 0x14e   : > { %v1005_v15 = vadd.f32 %v1004_v4, %v982_v11 }
 0x14f   : > { %v1027_v5 = vpop.f32.mrf.mxu3 }
 0x150   : > { %v1028_v20 = vadd.f32 %v1027_v5, %v1005_v15 }
 0x160   : > { %v1047_v6 = vpop.f32.mrf.mxu0 }
 0x161   : > { %v1048_v13 = vadd.f32 %v1047_v6, %v1025_v10 }
 0x163   : > { %v1070_v9 = vpop.f32.mrf.mxu1 }
 0x164   : > { %v1071_v17 = vadd.f32 %v1070_v9, %v1048_v13 }
 0x166   : > { %v1093_v12 = vpop.f32.mrf.mxu2 }
 0x167   : > { %v1094_v21 = vadd.f32 %v1093_v12, %v1071_v17 }
 0x169   : > { %v1116_v14 = vpop.f32.mrf.mxu3 }
 0x16a   : > { %v1050_v16 = vpop.f32.mrf.mxu0  ;;  %v1117_v26 = vadd.f32 %v1116_v14, %v1094_v21 }
 0x16b   : > { %v1051_v22 = vadd.f32 %v1050_v16, %v1028_v20 }
 0x16d   : > { %v1073_v19 = vpop.f32.mrf.mxu1 }
 0x16e   : > { %v1074_v25 = vadd.f32 %v1073_v19, %v1051_v22 }
 0x170   : > { %v1096_v23 = vpop.f32.mrf.mxu2 }
 0x171   : > { %v1097_v33 = vadd.f32 %v1096_v23, %v1074_v25 }
 0x173   : > { %v1119_v28 = vpop.f32.mrf.mxu3 }
 0x174   : > { %v1120_v35 = vadd.f32 %v1119_v28, %v1097_v33 }
 0x184   : > { %v1139_v29 = vpop.f32.mrf.mxu0 }
 0x185   : > { %v1140_v31 = vadd.f32 %v1139_v29, %v1117_v26 }
 0x186   : > { %v1162_v18 = vpop.f32.mrf.mxu1 }
 0x187   : > { %v1163_v27 = vadd.f32 %v1162_v18, %v1140_v31 }
 0x18a   : > { %v1185_v30 = vpop.f32.mrf.mxu2 }
 0x18b   : > { %v1186_v36 = vadd.f32 %v1185_v30, %v1163_v27 }
 0x18c   : > { %v1142_v37 = vpop.f32.mrf.mxu0  ;;  %v1208_v62 = vpop.f32.mrf.mxu3 }
 0x18d   : > { %v1143_v38 = vadd.f32 %v1142_v37, %v1120_v35  ;;  %v1209_v32 = vadd.f32 %v1208_v62, %v1186_v36 }
 0x18e   : > { %v1165_v39 = vpop.f32.mrf.mxu1 }
 0x18f   : > { %v1166_v34 = vadd.f32 %v1165_v39, %v1143_v38 }
 0x191   : > { %1217 = sbr.rel (%p1346_p2) target bundleno = 408 (0x198), region = 56 }
 0x192   : > { %v1188_v40 = vpop.f32.mrf.mxu2 }
 0x193   : > { %v1189_v41 = vadd.f32 %v1188_v40, %v1166_v34 }
 0x194   : > { %v1211_v42 = vpop.f32.mrf.mxu3 }
 0x195   : > { %v1212_v24 = vadd.f32 %v1211_v42, %v1189_v41 }
 0x196   : > { %1218 = vst [vmem:[#allocation2] sm:$0xff] %v1209_v32 }
 0x197   : > { %1219 = vst [vmem:[#allocation2 + $0x8] sm:$0xff] %v1212_v24 }
 0x198 PF: > { %p1347_p3 = scmp.ne.s32.totalorder %s1551_s18, 9 }
 0x19a   : > { %1223 = sbr.rel (%p1347_p3) target bundleno = 417 (0x1a1), region = 60 }
 0x19f   : > { %1224 = vst [vmem:[%s2176_s4] sm:$0xff] %v1209_v32 }
 0x1a0   : > { %1225 = vst [vmem:[%s2176_s4 + $0x8] sm:$0xff] %v1212_v24 }
 0x1a1 PF: > { %s19_s20 = sadd.s32 1, %s1559_s20   ;;  %s2181_s15 = smov %s1543_s16 }
 0x1a2   : > { %p16_p4 = scmp.ge.s32.totalorder %s19_s20, 12   ;;  %s2182_s16 = smov %s1547_s17 }
 0x1a3   : > { %s2183_s17 = smov %s1669_s29  ;;  %s2184_s18 = smov %s1555_s19 }
 0x1a4   : > { %s2185_s19 = smov %s2187_s10  ;;  %18 = sbr.rel (!%p16_p4) target bundleno = 6 (0x6), region = 101 }
 0x1a9   :  { %1247 = vsyncpa [#allocation6], 1 }
 0x1aa   :  { %1249 = vsyncpa [#allocation6 + $0x1], 1 }
 0x1ab   :  { %1250 = vsyncpa [#allocation7], 1 }
 0x1ac   :  { %1252 = vsyncpa [#allocation7 + $0x1], 1 }
 0x1ad   :  { %1253 = vsyncpa [#allocation9], 1 }

</bundles_post_ra>
